<compile_context>
chip_gen: v7x
topology: tpu7x:2x2x1
jax: 0.10.0
libtpu: 0.0.40
codegen_flags: <defaults>
</compile_context>

<pallas_src>
import jax
import jax.numpy as jnp
from jax.experimental import pallas as pl
from jax.experimental.pallas import tpu as pltpu

# ---- module hyper-parameters (consistent with the PyTorch module) ----
N_CLASSES = 10
CLS_PAD = 16                                  # class table rows padded to 16
IMG_SHAPE = (1, 16, 16)                       # (C, H, W) -> prod = 256
IMG_FLAT = IMG_SHAPE[0] * IMG_SHAPE[1] * IMG_SHAPE[2]
HIDDEN = 512
OUT_PAD = 128                                 # lane-dense final-layer width
BATCH = 8


def _leaky_relu(x, slope=0.2):
    # Identical to where(x>0, x, slope*x) for slope < 1, but mul+max only.
    return jnp.maximum(x, slope * x)


def _disc_kernel(x_ref, lbl_ref, cls_ref,
                 w1_ref, w2_ref, b2_ref, w3_ref, b3_ref,
                 w4_ref, b4_ref, out_ref):
    """One batch-row tile of the MLP.

    x_ref   : (TM, 256)      bf16  flattened image rows
    lbl_ref : (TM, 1)        int32 class labels
    cls_ref : (16, 512)      f32   per-class (embedding @ W1_label + b1), padded
    w1/w2/w3: bf16 weights, b2/b3 f32 biases
    w4_ref  : (512, 128)     bf16  zero-padded final weight (col 0 is real)
    b4_ref  : (1, 128)       f32
    out_ref : (TM, 128)      f32   column 0 holds the logit
    """
    # Layer 1: image matmul, then add the per-class folded bias via a tiny
    # one-hot gather-matmul (exact selection, kept in f32).
    h = jnp.dot(x_ref[...], w1_ref[...],
                preferred_element_type=jnp.float32)               # (TM, 512)

    lbl = lbl_ref[...]                                            # (TM, 1)
    cls_ids = jax.lax.broadcasted_iota(
        jnp.int32, (lbl.shape[0], CLS_PAD), 1)                    # (TM, 16)
    onehot = (lbl == cls_ids).astype(jnp.float32)                 # (TM, 16)
    h = h + jnp.dot(onehot, cls_ref[...],
                    preferred_element_type=jnp.float32)           # + cls bias + b1
    h = _leaky_relu(h)

    h = jnp.dot(h.astype(jnp.bfloat16), w2_ref[...],
                preferred_element_type=jnp.float32)               # (TM, 512)
    h = _leaky_relu(h + b2_ref[...])          # Dropout(0.4) -> identity (eval)

    h = jnp.dot(h.astype(jnp.bfloat16), w3_ref[...],
                preferred_element_type=jnp.float32)               # (TM, 512)
    h = _leaky_relu(h + b3_ref[...])          # Dropout(0.4) -> identity (eval)

    # Final Linear(512, 1) as a lane-dense (512,128) matmul (unmasked stores).
    out_ref[...] = (jnp.dot(h.astype(jnp.bfloat16), w4_ref[...],
                            preferred_element_type=jnp.float32)
                    + b4_ref[...])                                # (TM, 128)


def init_params(key):
    """Deterministic parameter init mirroring the nn.Module shapes."""
    ks = jax.random.split(key, 9)

    def lin(kw, kb, fan_in, fan_out):
        bound = 1.0 / jnp.sqrt(fan_in)
        w = jax.random.uniform(kw, (fan_in, fan_out), jnp.float32, -bound, bound)
        b = jax.random.uniform(kb, (1, fan_out), jnp.float32, -bound, bound)
        return w, b

    # Full first-layer weight over the concatenated input [img_flat | emb].
    w1_full, b1 = lin(ks[0], ks[1], IMG_FLAT + N_CLASSES, HIDDEN)
    w2, b2 = lin(ks[2], ks[3], HIDDEN, HIDDEN)
    w3, b3 = lin(ks[4], ks[5], HIDDEN, HIDDEN)
    w4, b4 = lin(ks[6], ks[7], HIDDEN, 1)
    embedding = jax.random.normal(ks[8], (N_CLASSES, N_CLASSES), jnp.float32)

    # Fold the label path + b1 into a per-class first-layer bias table.
    w1_img = w1_full[:IMG_FLAT]                        # (256, 512)
    w1_lbl = w1_full[IMG_FLAT:]                        # (10, 512)
    cls_bias = embedding @ w1_lbl + b1                 # (10, 512), f32
    cls_bias = jnp.pad(cls_bias, ((0, CLS_PAD - N_CLASSES), (0, 0)))  # (16, 512)

    # Final layer padded to 128 lanes; column 0 is the real logit.
    w4_pad = jnp.pad(w4, ((0, 0), (0, OUT_PAD - 1)))   # (512, 128)
    b4_pad = jnp.pad(b4, ((0, 0), (0, OUT_PAD - 1)))   # (1, 128)

    return dict(
        embedding=embedding,
        cls_bias=cls_bias,
        w1=w1_img.astype(jnp.bfloat16),
        w2=w2.astype(jnp.bfloat16), b2=b2,
        w3=w3.astype(jnp.bfloat16), b3=b3,
        w4=w4_pad.astype(jnp.bfloat16), b4=b4_pad,
    )


@jax.jit
def discriminator_forward(img, labels, params):
    # ----- glue (plain JAX): flatten + bf16 cast, labels as int32 column -----
    B = img.shape[0]
    x_img = img.reshape(B, -1).astype(jnp.bfloat16)              # (B, 256)
    lbl = labels.reshape(B, 1).astype(jnp.int32)                 # (B, 1)

    # Row-tile size: fill the 256-row MXU M dim on v6e/v7x; once the batch
    # exceeds one tile the grid length is >= 2 so both v7x TCs get row tiles.
    B_pad = ((B + 7) // 8) * 8
    TM = min(256, B_pad)
    B_pad = ((B_pad + TM - 1) // TM) * TM
    if B_pad != B:
        pad = B_pad - B
        x_img = jnp.pad(x_img, ((0, pad), (0, 0)))
        lbl = jnp.pad(lbl, ((0, pad), (0, 0)))       # padded rows -> class 0

    grid = (B_pad // TM,)

    def row_spec(cols):
        return pl.BlockSpec((TM, cols), lambda i: (i, 0))

    def const_spec(shape):
        # Weights / tables: same block every row tile -> stays VMEM-resident.
        return pl.BlockSpec(shape, lambda i: (0, 0))

    out = pl.pallas_call(
        _disc_kernel,
        out_shape=jax.ShapeDtypeStruct((B_pad, OUT_PAD), jnp.float32),
        grid=grid,
        in_specs=[
            row_spec(IMG_FLAT),                       # x (bf16)
            row_spec(1),                              # labels (int32)
            const_spec((CLS_PAD, HIDDEN)),            # per-class L1 bias table
            const_spec((IMG_FLAT, HIDDEN)),           # w1 (bf16)
            const_spec((HIDDEN, HIDDEN)),             # w2 (bf16)
            const_spec((1, HIDDEN)),                  # b2
            const_spec((HIDDEN, HIDDEN)),             # w3 (bf16)
            const_spec((1, HIDDEN)),                  # b3
            const_spec((HIDDEN, OUT_PAD)),            # w4 padded (bf16)
            const_spec((1, OUT_PAD)),                 # b4 padded
        ],
        out_specs=pl.BlockSpec((TM, OUT_PAD), lambda i: (i, 0)),
        compiler_params=pltpu.CompilerParams(
            dimension_semantics=("parallel",)),
    )(x_img, lbl, params["cls_bias"],
      params["w1"],
      params["w2"], params["b2"],
      params["w3"], params["b3"],
      params["w4"], params["b4"])

    # Column 0 holds the real logit; drop padded rows / lanes.
    return out[:B, :1]


if __name__ == "__main__":
    key = jax.random.PRNGKey(0)
    k_params, k_img, k_lbl = jax.random.split(key, 3)

    params = init_params(k_params)
    img = jax.random.normal(k_img, (BATCH,) + IMG_SHAPE, jnp.float32)   # NCHW
    labels = jax.random.randint(k_lbl, (BATCH,), 0, N_CLASSES)

    validity = discriminator_forward(img, labels, params)
    jax.block_until_ready(validity)

    assert validity.shape == (BATCH, 1), validity.shape
    assert validity.dtype == jnp.float32
    assert bool(jnp.all(jnp.isfinite(validity)))
    print("KERNEL_OK")
</pallas_src>

<mosaic_0001>
module attributes {stable_mosaic.version = 11 : i64} {
  func.func @_disc_kernel(%arg0: i32, %arg1: memref<8x256xbf16, #tpu.memory_space<vmem>>, %arg2: memref<8x1xi32, #tpu.memory_space<vmem>>, %arg3: memref<16x512xf32, #tpu.memory_space<vmem>>, %arg4: memref<256x512xbf16, #tpu.memory_space<vmem>>, %arg5: memref<512x512xbf16, #tpu.memory_space<vmem>>, %arg6: memref<1x512xf32, #tpu.memory_space<vmem>>, %arg7: memref<512x512xbf16, #tpu.memory_space<vmem>>, %arg8: memref<1x512xf32, #tpu.memory_space<vmem>>, %arg9: memref<512x128xbf16, #tpu.memory_space<vmem>>, %arg10: memref<1x128xf32, #tpu.memory_space<vmem>>, %arg11: memref<8x128xf32, #tpu.memory_space<vmem>>) attributes {dimension_semantics = [#tpu.dimension_semantics<parallel>], iteration_bounds = array<i64: 1>, scalar_prefetch = 0 : i64, scratch_operands = 0 : i64, tpu.core_type = #tpu.core_type<tc>, window_params = [{transform_indices = @transform_0, window_bounds = array<i64: 8, 256>}, {transform_indices = @transform_1, window_bounds = array<i64: 8, 1>}, {pipeline_mode = #tpu.pipeline_mode<synchronous>, transform_indices = @transform_2, window_bounds = array<i64: 16, 512>}, {pipeline_mode = #tpu.pipeline_mode<synchronous>, transform_indices = @transform_3, window_bounds = array<i64: 256, 512>}, {pipeline_mode = #tpu.pipeline_mode<synchronous>, transform_indices = @transform_4, window_bounds = array<i64: 512, 512>}, {pipeline_mode = #tpu.pipeline_mode<synchronous>, transform_indices = @transform_5, window_bounds = array<i64: 1, 512>}, {pipeline_mode = #tpu.pipeline_mode<synchronous>, transform_indices = @transform_6, window_bounds = array<i64: 512, 512>}, {pipeline_mode = #tpu.pipeline_mode<synchronous>, transform_indices = @transform_7, window_bounds = array<i64: 1, 512>}, {pipeline_mode = #tpu.pipeline_mode<synchronous>, transform_indices = @transform_8, window_bounds = array<i64: 512, 128>}, {pipeline_mode = #tpu.pipeline_mode<synchronous>, transform_indices = @transform_9, window_bounds = array<i64: 1, 128>}, {transform_indices = @transform_10, window_bounds = array<i64: 8, 128>}]} {
    %c0 = arith.constant 0 : index
    %c0_0 = arith.constant 0 : index
    %0 = vector.load %arg1[%c0, %c0_0] : memref<8x256xbf16, #tpu.memory_space<vmem>>, vector<8x256xbf16>
    %c0_1 = arith.constant 0 : index
    %c0_2 = arith.constant 0 : index
    %1 = vector.load %arg4[%c0_1, %c0_2] : memref<256x512xbf16, #tpu.memory_space<vmem>>, vector<256x512xbf16>
    %cst = arith.constant dense<0.000000e+00> : vector<8x512xf32>
    %2 = tpu.matmul %0, %1, %cst {dimension_numbers = #tpu.dot_dimension_numbers<[1], [0], [0], [1], [0, 0, 1, 1], [], []>} : vector<8x256xbf16>, vector<256x512xbf16>, vector<8x512xf32> -> vector<8x512xf32>
    %c0_3 = arith.constant 0 : index
    %c0_4 = arith.constant 0 : index
    %3 = vector.load %arg2[%c0_3, %c0_4] : memref<8x1xi32, #tpu.memory_space<vmem>>, vector<8x1xi32>
    %4 = tpu.iota {dimensions = array<i32: 1>} : vector<8x16xi32>
    %5 = vector.broadcast %3 : vector<8x1xi32> to vector<8x16xi32>
    %6 = arith.cmpi eq, %5, %4 : vector<8x16xi32>
    %7 = arith.extui %6 : vector<8x16xi1> to vector<8x16xi32>
    %8 = arith.sitofp %7 : vector<8x16xi32> to vector<8x16xf32>
    %c0_5 = arith.constant 0 : index
    %c0_6 = arith.constant 0 : index
    %9 = vector.load %arg3[%c0_5, %c0_6] : memref<16x512xf32, #tpu.memory_space<vmem>>, vector<16x512xf32>
    %cst_7 = arith.constant dense<0.000000e+00> : vector<8x512xf32>
    %10 = tpu.matmul %8, %9, %cst_7 {dimension_numbers = #tpu.dot_dimension_numbers<[1], [0], [0], [1], [0, 0, 1, 1], [], []>} : vector<8x16xf32>, vector<16x512xf32>, vector<8x512xf32> -> vector<8x512xf32>
    %11 = arith.addf %2, %10 : vector<8x512xf32>
    %cst_8 = arith.constant 2.000000e-01 : f32
    %12 = vector.broadcast %cst_8 : f32 to vector<8x512xf32>
    %13 = arith.mulf %12, %11 : vector<8x512xf32>
    %14 = arith.maximumf %11, %13 : vector<8x512xf32>
    %15 = arith.truncf %14 : vector<8x512xf32> to vector<8x512xbf16>
    %c0_9 = arith.constant 0 : index
    %c0_10 = arith.constant 0 : index
    %16 = vector.load %arg5[%c0_9, %c0_10] : memref<512x512xbf16, #tpu.memory_space<vmem>>, vector<512x512xbf16>
    %cst_11 = arith.constant dense<0.000000e+00> : vector<8x512xf32>
    %17 = tpu.matmul %15, %16, %cst_11 {dimension_numbers = #tpu.dot_dimension_numbers<[1], [0], [0], [1], [0, 0, 1, 1], [], []>} : vector<8x512xbf16>, vector<512x512xbf16>, vector<8x512xf32> -> vector<8x512xf32>
    %c0_12 = arith.constant 0 : index
    %c0_13 = arith.constant 0 : index
    %18 = vector.load %arg6[%c0_12, %c0_13] : memref<1x512xf32, #tpu.memory_space<vmem>>, vector<1x512xf32>
    %19 = vector.broadcast %18 : vector<1x512xf32> to vector<8x512xf32>
    %20 = arith.addf %17, %19 : vector<8x512xf32>
    %cst_14 = arith.constant 2.000000e-01 : f32
    %21 = vector.broadcast %cst_14 : f32 to vector<8x512xf32>
    %22 = arith.mulf %21, %20 : vector<8x512xf32>
    %23 = arith.maximumf %20, %22 : vector<8x512xf32>
    %24 = arith.truncf %23 : vector<8x512xf32> to vector<8x512xbf16>
    %c0_15 = arith.constant 0 : index
    %c0_16 = arith.constant 0 : index
    %25 = vector.load %arg7[%c0_15, %c0_16] : memref<512x512xbf16, #tpu.memory_space<vmem>>, vector<512x512xbf16>
    %cst_17 = arith.constant dense<0.000000e+00> : vector<8x512xf32>
    %26 = tpu.matmul %24, %25, %cst_17 {dimension_numbers = #tpu.dot_dimension_numbers<[1], [0], [0], [1], [0, 0, 1, 1], [], []>} : vector<8x512xbf16>, vector<512x512xbf16>, vector<8x512xf32> -> vector<8x512xf32>
    %c0_18 = arith.constant 0 : index
    %c0_19 = arith.constant 0 : index
    %27 = vector.load %arg8[%c0_18, %c0_19] : memref<1x512xf32, #tpu.memory_space<vmem>>, vector<1x512xf32>
    %28 = vector.broadcast %27 : vector<1x512xf32> to vector<8x512xf32>
    %29 = arith.addf %26, %28 : vector<8x512xf32>
    %cst_20 = arith.constant 2.000000e-01 : f32
    %30 = vector.broadcast %cst_20 : f32 to vector<8x512xf32>
    %31 = arith.mulf %30, %29 : vector<8x512xf32>
    %32 = arith.maximumf %29, %31 : vector<8x512xf32>
    %33 = arith.truncf %32 : vector<8x512xf32> to vector<8x512xbf16>
    %c0_21 = arith.constant 0 : index
    %c0_22 = arith.constant 0 : index
    %34 = vector.load %arg9[%c0_21, %c0_22] : memref<512x128xbf16, #tpu.memory_space<vmem>>, vector<512x128xbf16>
    %cst_23 = arith.constant dense<0.000000e+00> : vector<8x128xf32>
    %35 = tpu.matmul %33, %34, %cst_23 {dimension_numbers = #tpu.dot_dimension_numbers<[1], [0], [0], [1], [0, 0, 1, 1], [], []>} : vector<8x512xbf16>, vector<512x128xbf16>, vector<8x128xf32> -> vector<8x128xf32>
    %c0_24 = arith.constant 0 : index
    %c0_25 = arith.constant 0 : index
    %36 = vector.load %arg10[%c0_24, %c0_25] : memref<1x128xf32, #tpu.memory_space<vmem>>, vector<1x128xf32>
    %37 = vector.broadcast %36 : vector<1x128xf32> to vector<8x128xf32>
    %38 = arith.addf %35, %37 : vector<8x128xf32>
    %c0_26 = arith.constant 0 : index
    %c0_27 = arith.constant 0 : index
    %39 = vector.load %arg11[%c0_26, %c0_27] : memref<8x128xf32, #tpu.memory_space<vmem>>, vector<8x128xf32>
    tpu.vector_store %arg11[%c0_26, %c0_27], %38 {strides = array<i32>} : memref<8x128xf32, #tpu.memory_space<vmem>>, vector<8x128xf32>,
    return
  }
  func.func @transform_0(%arg0: i32) -> (i32, i32) {
    %c0_i32 = arith.constant 0 : i32
    %c0_i32_0 = arith.constant 0 : i32
    return %arg0, %c0_i32 : i32, i32
  }
  func.func @transform_1(%arg0: i32) -> (i32, i32) {
    %c0_i32 = arith.constant 0 : i32
    %c0_i32_0 = arith.constant 0 : i32
    return %arg0, %c0_i32 : i32, i32
  }
  func.func @transform_2(%arg0: i32) -> (i32, i32) {
    %c0_i32 = arith.constant 0 : i32
    %c0_i32_0 = arith.constant 0 : i32
    %c0_i32_1 = arith.constant 0 : i32
    return %c0_i32, %c0_i32_0 : i32, i32
  }
  func.func @transform_3(%arg0: i32) -> (i32, i32) {
    %c0_i32 = arith.constant 0 : i32
    %c0_i32_0 = arith.constant 0 : i32
    %c0_i32_1 = arith.constant 0 : i32
    return %c0_i32, %c0_i32_0 : i32, i32
  }
  func.func @transform_4(%arg0: i32) -> (i32, i32) {
    %c0_i32 = arith.constant 0 : i32
    %c0_i32_0 = arith.constant 0 : i32
    %c0_i32_1 = arith.constant 0 : i32
    return %c0_i32, %c0_i32_0 : i32, i32
  }
  func.func @transform_5(%arg0: i32) -> (i32, i32) {
    %c0_i32 = arith.constant 0 : i32
    %c0_i32_0 = arith.constant 0 : i32
    %c0_i32_1 = arith.constant 0 : i32
    return %c0_i32, %c0_i32_0 : i32, i32
  }
  func.func @transform_6(%arg0: i32) -> (i32, i32) {
    %c0_i32 = arith.constant 0 : i32
    %c0_i32_0 = arith.constant 0 : i32
    %c0_i32_1 = arith.constant 0 : i32
    return %c0_i32, %c0_i32_0 : i32, i32
  }
  func.func @transform_7(%arg0: i32) -> (i32, i32) {
    %c0_i32 = arith.constant 0 : i32
    %c0_i32_0 = arith.constant 0 : i32
    %c0_i32_1 = arith.constant 0 : i32
    return %c0_i32, %c0_i32_0 : i32, i32
  }
  func.func @transform_8(%arg0: i32) -> (i32, i32) {
    %c0_i32 = arith.constant 0 : i32
    %c0_i32_0 = arith.constant 0 : i32
    %c0_i32_1 = arith.constant 0 : i32
    return %c0_i32, %c0_i32_0 : i32, i32
  }
  func.func @transform_9(%arg0: i32) -> (i32, i32) {
    %c0_i32 = arith.constant 0 : i32
    %c0_i32_0 = arith.constant 0 : i32
    %c0_i32_1 = arith.constant 0 : i32
    return %c0_i32, %c0_i32_0 : i32, i32
  }
  func.func @transform_10(%arg0: i32) -> (i32, i32) {
    %c0_i32 = arith.constant 0 : i32
    %c0_i32_0 = arith.constant 0 : i32
    return %arg0, %c0_i32 : i32, i32
  }
}

</mosaic_0001>

<bundles_post_ra>
// kernel: discriminator_forward.1
= control target key start
LH: loop header
LB: loop body
LE: loop exit
PB: predicated region body
PF: predicated region fallthrough
CT: control target
= control target key end

     0   :  { %15 = vsyncpa [#allocation3], 0  ;;  %s4362_s0 = inlined_call_operand.vmem [shape: bf16[8,256], index: 0, kind: input, shape index: {}]   ;;  %s4363_s1 = inlined_call_operand.vmem [shape: s32[8,1], index: 1, kind: input, shape index: {}]   ;;  %s4364_s2 = inlined_call_operand.hbm [shape: f32[16,512], index: 2, kind: input, shape index: {}]   ;;  %s4365_s3 = inlined_call_operand.hbm [shape: bf16[256,512], index: 3, kind: input, shape index: {}]   ;;  %s4366_s4 = inlined_call_operand.hbm [shape: bf16[512,512], index: 4, kind: input, shape index: {}]   ;;  %s4367_s5 = inlined_call_operand.vmem [shape: f32[1,512], index: 5, kind: input, shape index: {}]   ;;  %s4368_s6 = inlined_call_operand.hbm [shape: bf16[512,512], index: 6, kind: input, shape index: {}]   ;;  %s4369_s7 = inlined_call_operand.vmem [shape: f32[1,512], index: 7, kind: input, shape index: {}]   ;;  %s4370_s8 = inlined_call_operand.vmem [shape: bf16[512,128], index: 8, kind: input, shape index: {}]   ;;  %s4371_s9 = inlined_call_operand.vmem [shape: f32[1,128], index: 9, kind: input, shape index: {}]   ;;  %s4372_s10 = inlined_call_operand.vmem [shape: f32[8,128], index: 10, kind: output, shape index: {}]  }
   0x1   :  { %16 = vsyncpa [#allocation5], 0 }
   0x2   :  { %17 = vsyncpa [#allocation8], 0  ;;  %s4076_s13 = smov [#allocation4]   ;;  %s3982_s17 = scalar_lea.hbm %s4365_s3, 8192 }
   0x3   :  { %s39_s14 = sshll.u32 %s4076_s13, 4  ;;  %p3983_p0 = scmp.ne.s32.totalorder %s4365_s3, %s3982_s17  ;;  %s40_s14 = int_to_ptr.vmem [resolvable:$true] %s39_s14 }
   0x4   :  { %p3986_p1 = scmp.lt.u32.totalorder %s3982_s17, %s4365_s3 }
   0x6   :  { %p3988_p2 = pnand %p3986_p1, %p3983_p0 }
   0x8   :  { %3991 = shalt.err (!%p3988_p2)
}
   0x9   :  { %s3992_s22 = scalar_lea.vmem %s40_s14, 8192  ;;  %p3997_p4 = scmp.lt.s32.totalorder %s40_s14, %s40_s14 }
   0xa   :  { %p3993_p3 = scmp.ne.s32.totalorder %s40_s14, %s3992_s22  ;;  %p3998_p5 = scmp.lt.s32.totalorder %s3992_s22, %s3992_s22 }
   0xc   :  { %p3999_p6 = por %p3998_p5, %p3997_p4 }
   0xe   :  { %p4000_p7 = pnand %p3999_p6, %p3993_p3 }
  0x10   :  { %4003 = shalt.err (!%p4000_p7)
}
  0x11   :  { %s4077_s23 = smov 256   ;;  %s4078_s24 = smov 16  }
  0x12   :  { %45 = dma.hbm_to_vmem [thread:$0]  %s4365_s3, 8192, %s40_s14, [#allocation5], %s4077_s23, %s4077_s23, %s4078_s24  }
  0x13   :  { %s4079_s27 = smov [#allocation2]   ;;  %s4004_s11 = scalar_lea.hbm %s4364_s2, 1024 }
  0x14   :  { %s27_s28 = sshll.u32 %s4079_s27, 4  ;;  %p4005_p8 = scmp.ne.s32.totalorder %s4364_s2, %s4004_s11  ;;  %s28_s28 = int_to_ptr.vmem [resolvable:$true] %s27_s28 }
  0x15   :  { %p4008_p9 = scmp.lt.u32.totalorder %s4004_s11, %s4364_s2 }
  0x17   :  { %p4010_p10 = pnand %p4008_p9, %p4005_p8 }
  0x19   :  { %4013 = shalt.err (!%p4010_p10)
}
  0x1a   :  { %s4014_s17 = scalar_lea.vmem %s28_s28, 1024  ;;  %p4019_p12 = scmp.lt.s32.totalorder %s28_s28, %s28_s28 }
  0x1b   :  { %p4015_p11 = scmp.ne.s32.totalorder %s28_s28, %s4014_s17  ;;  %p4020_p13 = scmp.lt.s32.totalorder %s4014_s17, %s4014_s17 }
  0x1d   :  { %p4021_p0 = por %p4020_p13, %p4019_p12 }
  0x1f   :  { %p4022_p1 = pnand %p4021_p0, %p4015_p11 }
  0x21   :  { %4025 = shalt.err (!%p4022_p1)
}
  0x22   :  { %s4080_s3 = smov 512   ;;  %s4081_s14 = smov 32  }
  0x23   :  { %33 = dma.hbm_to_vmem [thread:$0]  %s4364_s2, 1024, %s28_s28, [#allocation3], %s4080_s3, %s4080_s3, %s4081_s14  }
  0x24   :  { %s4082_s20 = smov [#allocation6]   ;;  %s4083_s22 = smov [#allocation7]  }
  0x25   :  { %s51_s21 = sshll.u32 %s4082_s20, 4  ;;  %s65_s25 = sshll.u32 %s4083_s22, 4  ;;  %s52_s21 = int_to_ptr.vmem [resolvable:$true] %s51_s21  ;;  %s4168_s25 = int_to_ptr.vmem [resolvable:$true] %s65_s25 }
  0x26   :  { %s4026_s29 = scalar_lea.hbm %s4366_s4, 16384 }
  0x27   :  { %p4027_p2 = scmp.ne.s32.totalorder %s4366_s4, %s4026_s29  ;;  %p4030_p3 = scmp.lt.u32.totalorder %s4026_s29, %s4366_s4 }
  0x29   :  { %p4032_p4 = pnand %p4030_p3, %p4027_p2 }
  0x2b   :  { %4035 = shalt.err (!%p4032_p4)
}
  0x2c   :  { %s4036_s2 = scalar_lea.vmem %s52_s21, 16384  ;;  %p4041_p6 = scmp.lt.s32.totalorder %s52_s21, %s52_s21 }
  0x2d   :  { %p4037_p5 = scmp.ne.s32.totalorder %s52_s21, %s4036_s2  ;;  %p4042_p7 = scmp.lt.s32.totalorder %s4036_s2, %s4036_s2 }
  0x2f   :  { %p4043_p8 = por %p4042_p7, %p4041_p6 }
  0x31   :  { %p4044_p9 = pnand %p4043_p8, %p4037_p5 }
  0x33   :  { %4047 = shalt.err (!%p4044_p9)
}
  0x34   :  { %57 = dma.hbm_to_vmem [thread:$0]  %s4366_s4, 16384, %s52_s21, [#allocation5], %s4077_s23, %s4077_s23, %s4078_s24  }
  0x35   :  { %s4048_s3 = scalar_lea.hbm %s4368_s6, 16384 }
  0x36   :  { %p4049_p10 = scmp.ne.s32.totalorder %s4368_s6, %s4048_s3  ;;  %p4052_p11 = scmp.lt.u32.totalorder %s4048_s3, %s4368_s6 }
  0x38   :  { %p4054_p12 = pnand %p4052_p11, %p4049_p10 }
  0x3a   :  { %4057 = shalt.err (!%p4054_p12)
}
  0x3b   :  { %s4058_s22 = scalar_lea.vmem %s4168_s25, 16384  ;;  %p4063_p0 = scmp.lt.s32.totalorder %s4168_s25, %s4168_s25 }
  0x3c   :  { %p4059_p13 = scmp.ne.s32.totalorder %s4168_s25, %s4058_s22  ;;  %p4064_p1 = scmp.lt.s32.totalorder %s4058_s22, %s4058_s22 }
  0x3e   :  { %p4065_p2 = por %p4064_p1, %p4063_p0 }
  0x40   :  { %p4066_p3 = pnand %p4065_p2, %p4059_p13 }
  0x42   :  { %4069 = shalt.err (!%p4066_p3)
}
  0x43   :  { %71 = dma.hbm_to_vmem [thread:$0]  %s4368_s6, 16384, %s4168_s25, [#allocation8], %s4077_s23, %s4077_s23, %s4078_s24  }
  0x44   :  { %4070 = dma.done.wait [#allocation3], 1024  }
  0x45   :  { %4071 = vsyncadd [#allocation3], 4294966272 }
  0x46   :  { %4072 = dma.done.wait [#allocation5], 24576  }
  0x47   :  { %4073 = vsyncadd [#allocation5], 4294942720 }
  0x48   :  { %4074 = dma.done.wait [#allocation8], 16384  }
  0x49   :  { %4075 = vsyncadd [#allocation8], 4294950912  ;;  %v4084_v0 = vmov 0   ;;  %v4085_v1 = vmov 0.0   ;;  %v156_v2 = vld [vmem:[%s4363_s1] sm:$0xff]  ;;  %v166_v3 = vld [vmem:[#allocation2 + $0x8] sm:$0xff]  ;;  %v157_v17 = vlaneseq }
  0x4a   :  { %3467 = vset.pattern.permute.xlu0 %v4084_v0  ;;  %241 = vmatprep.mubr.f32.mxu0 %v4085_v1  ;;  %v170_v4 = vld [vmem:[#allocation2 + $0x28] sm:$0xff]  ;;  %v168_v6 = vld [vmem:[#allocation2 + $0x18] sm:$0xff]  ;;  %v165_v8 = vld [vmem:[#allocation2] sm:$0xff]  ;;  %vm173_vm0 = vcmask 130048  }
  0x4b   :  { %312 = vmatprep.mubr.f32.mxu1 %v4085_v1  ;;  %160 = vperm.xlu0 %3467, %v156_v2   ;;  %v3425_v5 = vpack.c.bf16 %v170_v4, %v166_v3  ;;  %v172_v7 = vld [vmem:[#allocation2 + $0x38] sm:$0xff]  ;;  %v169_v10 = vld [vmem:[#allocation2 + $0x20] sm:$0xff]  ;;  %v167_v11 = vld [vmem:[#allocation2 + $0x10] sm:$0xff]  ;;  %v158_v18 = vand.u32 127, %v157_v17 }
  0x4c   :  { %v3429_v9 = vpack.c.bf16 %v172_v7, %v168_v6  ;;  %v171_v12 = vld [vmem:[#allocation2 + $0x30] sm:$0xff]  ;;  %v3427_v13 = vpack.c.bf16 %v169_v10, %v165_v8  ;;  %v3473_v16 = vld [vmem:[#allocation4 + $0xc] ss:$16 sps:$4 sm:$0xff]   ;;  %v4212_v19 = vld [vmem:[%s4362_s0] sm:$0xff] }
  0x4d   :  { %3426 = vmatprep.subr.bf16.mxu0 %v3425_v5  ;;  %v3431_v14 = vpack.c.bf16 %v171_v12, %v167_v11  ;;  %v3470_v15 = vld [vmem:[#allocation4 + $0x4] ss:$16 sps:$4 sm:$0xff]   ;;  %v3468_v20 = vld [vmem:[#allocation4] ss:$16 sps:$4 sm:$0xff]   ;;  %v3471_v21 = vld [vmem:[#allocation4 + $0x8] ss:$16 sps:$4 sm:$0xff]   ;;  %v3027_v28 = vcombine.high %v4212_v19, %v4212_v19 }
  0x4e   :  { %3430 = vmatprep.subr.bf16.mxu1 %v3429_v9  ;;  %3428 = vmatpush1.bf16.msra.mxu0 %v3427_v13  ;;  %v3476_v22 = vld [vmem:[#allocation4 + $0x24] ss:$16 sps:$4 sm:$0xff]   ;;  %v3479_v23 = vld [vmem:[#allocation4 + $0x2c] ss:$16 sps:$4 sm:$0xff]   ;;  %v3474_v26 = vld [vmem:[#allocation4 + $0x20] ss:$16 sps:$4 sm:$0xff]  }
  0x4f   :  { %3432 = vmatpush1.bf16.msra.mxu1 %v3431_v14  ;;  %646 = vmatprep.subr.bf16.mxu0 %v3470_v15  ;;  %v3477_v27 = vld [vmem:[#allocation4 + $0x28] ss:$16 sps:$4 sm:$0xff]   ;;  %v3482_v29 = vld [vmem:[#allocation4 + $0x44] ss:$16 sps:$4 sm:$0xff]   ;;  %v3485_v30 = vld [vmem:[#allocation4 + $0x4c] ss:$16 sps:$4 sm:$0xff]  }
  0x50   :  { %687 = vmatprep.subr.bf16.mxu1 %v3473_v16  ;;  %v3480_v31 = vld [vmem:[#allocation4 + $0x40] ss:$16 sps:$4 sm:$0xff]   ;;  %v3483_v32 = vld [vmem:[#allocation4 + $0x48] ss:$16 sps:$4 sm:$0xff]   ;;  %v3488_v33 = vld [vmem:[#allocation4 + $0x64] ss:$16 sps:$4 sm:$0xff]  }
  0x51   :  { %v3491_v34 = vld [vmem:[#allocation4 + $0x6c] ss:$16 sps:$4 sm:$0xff]   ;;  %v3486_v35 = vld [vmem:[#allocation4 + $0x60] ss:$16 sps:$4 sm:$0xff]   ;;  %v3489_v36 = vld [vmem:[#allocation4 + $0x68] ss:$16 sps:$4 sm:$0xff]  }
  0x52   :  { %v3494_v37 = vld [vmem:[#allocation4 + $0x84] ss:$16 sps:$4 sm:$0xff]   ;;  %v3497_v38 = vld [vmem:[#allocation4 + $0x8c] ss:$16 sps:$4 sm:$0xff]   ;;  %v3492_v39 = vld [vmem:[#allocation4 + $0x80] ss:$16 sps:$4 sm:$0xff]  }
  0x53   :  { %v3495_v40 = vld [vmem:[#allocation4 + $0x88] ss:$16 sps:$4 sm:$0xff]   ;;  %v3500_v41 = vld [vmem:[#allocation4 + $0xa4] ss:$16 sps:$4 sm:$0xff]   ;;  %v3503_v42 = vld [vmem:[#allocation4 + $0xac] ss:$16 sps:$4 sm:$0xff]  }
  0x54   :  { %v3498_v43 = vld [vmem:[#allocation4 + $0xa0] ss:$16 sps:$4 sm:$0xff]   ;;  %v3501_v44 = vld [vmem:[#allocation4 + $0xa8] ss:$16 sps:$4 sm:$0xff]   ;;  %v3506_v45 = vld [vmem:[#allocation4 + $0xc4] ss:$16 sps:$4 sm:$0xff]  }
  0x55   :  { %v3509_v46 = vld [vmem:[#allocation4 + $0xcc] ss:$16 sps:$4 sm:$0xff]   ;;  %v3504_v47 = vld [vmem:[#allocation4 + $0xc0] ss:$16 sps:$4 sm:$0xff]   ;;  %v3507_v48 = vld [vmem:[#allocation4 + $0xc8] ss:$16 sps:$4 sm:$0xff]  }
  0x56   :  { %v3512_v49 = vld [vmem:[#allocation4 + $0xe4] ss:$16 sps:$4 sm:$0xff]   ;;  %v3515_v50 = vld [vmem:[#allocation4 + $0xec] ss:$16 sps:$4 sm:$0xff]   ;;  %v3510_v51 = vld [vmem:[#allocation4 + $0xe0] ss:$16 sps:$4 sm:$0xff]  }
  0x57   :  { %v3513_v52 = vld [vmem:[#allocation4 + $0xe8] ss:$16 sps:$4 sm:$0xff]   ;;  %v3518_v53 = vld [vmem:[#allocation4 + $0x104] ss:$16 sps:$4 sm:$0xff]   ;;  %v3521_v54 = vld [vmem:[#allocation4 + $0x10c] ss:$16 sps:$4 sm:$0xff]  }
  0x58   :  { %v3516_v55 = vld [vmem:[#allocation4 + $0x100] ss:$16 sps:$4 sm:$0xff]   ;;  %v3519_v56 = vld [vmem:[#allocation4 + $0x108] ss:$16 sps:$4 sm:$0xff]   ;;  %v3524_v57 = vld [vmem:[#allocation4 + $0x124] ss:$16 sps:$4 sm:$0xff]  }
  0x59   :  { %v3527_v58 = vld [vmem:[#allocation4 + $0x12c] ss:$16 sps:$4 sm:$0xff]   ;;  %v3522_v59 = vld [vmem:[#allocation4 + $0x120] ss:$16 sps:$4 sm:$0xff]   ;;  %v3525_v60 = vld [vmem:[#allocation4 + $0x128] ss:$16 sps:$4 sm:$0xff]  }
  0x5a   :  { %v3530_v61 = vld [vmem:[#allocation4 + $0x144] ss:$16 sps:$4 sm:$0xff]   ;;  %v3533_v62 = vld [vmem:[#allocation4 + $0x14c] ss:$16 sps:$4 sm:$0xff]   ;;  %v3528_v63 = vld [vmem:[#allocation4 + $0x140] ss:$16 sps:$4 sm:$0xff]  }
  0x5b   :  { %v3531_v0 = vld [vmem:[#allocation4 + $0x148] ss:$16 sps:$4 sm:$0xff]   ;;  %v3539_v2 = vld [vmem:[#allocation4 + $0x16c] ss:$16 sps:$4 sm:$0xff]   ;;  %v3534_v3 = vld [vmem:[#allocation4 + $0x160] ss:$16 sps:$4 sm:$0xff]  }
  0x5c   :  { %v3537_v4 = vld [vmem:[#allocation4 + $0x168] ss:$16 sps:$4 sm:$0xff]   ;;  %v3542_v5 = vld [vmem:[#allocation4 + $0x184] ss:$16 sps:$4 sm:$0xff]   ;;  %v3545_v6 = vld [vmem:[#allocation4 + $0x18c] ss:$16 sps:$4 sm:$0xff]  }
  0x5d   :  { %v3540_v7 = vld [vmem:[#allocation4 + $0x180] ss:$16 sps:$4 sm:$0xff]   ;;  %v3543_v8 = vld [vmem:[#allocation4 + $0x188] ss:$16 sps:$4 sm:$0xff]   ;;  %v3548_v9 = vld [vmem:[#allocation4 + $0x1a4] ss:$16 sps:$4 sm:$0xff]  }
  0x5e   :  { %v3551_v10 = vld [vmem:[#allocation4 + $0x1ac] ss:$16 sps:$4 sm:$0xff]   ;;  %v3546_v11 = vld [vmem:[#allocation4 + $0x1a0] ss:$16 sps:$4 sm:$0xff]   ;;  %v3549_v12 = vld [vmem:[#allocation4 + $0x1a8] ss:$16 sps:$4 sm:$0xff]  }
  0x5f   :  { %v3554_v13 = vld [vmem:[#allocation4 + $0x1c4] ss:$16 sps:$4 sm:$0xff]   ;;  %v3557_v14 = vld [vmem:[#allocation4 + $0x1cc] ss:$16 sps:$4 sm:$0xff]   ;;  %v3552_v15 = vld [vmem:[#allocation4 + $0x1c0] ss:$16 sps:$4 sm:$0xff]  }
  0x60   :  { %v3555_v16 = vld [vmem:[#allocation4 + $0x1c8] ss:$16 sps:$4 sm:$0xff]  }
  0xca   :  { %v161_v24 = vpop.permute.xlu0 %160 }
  0xcb   :  { %vm162_vm1 = vcmp.eq.s32.totalorder %v161_v24, %v158_v18  ;;  %v3560_v18 = vld [vmem:[#allocation4 + $0x1e4] ss:$16 sps:$4 sm:$0xff]   ;;  %v3566_v24 = vld [vmem:[#allocation6] ss:$16 sps:$4 sm:$0xff]  }
  0xcc   :  { %v3023_v25 = vsel %vm162_vm1, 1.0, %v4085_v1  ;;  %v3536_v1 = vld [vmem:[#allocation4 + $0x164] ss:$16 sps:$4 sm:$0xff]  }
  0xcd   :  { %3024 = vmatmul.mubr.msk.f32.vlgmr.msra.gmra.mrb[0].mxu0 %vm173_vm0, %v3023_v25  ;;  %3025 = vmatmul.mubr.msk.f32.vlgmr.msra.gmra.mrb[0].mxu1 %vm173_vm0, %v3023_v25  ;;  %v3568_v25 = vld [vmem:[#allocation6 + $0x4] ss:$16 sps:$4 sm:$0xff]  }
  0xce   :  { %647 = vmatpush1.bf16.msra.mxu0 %v3468_v20  ;;  %688 = vmatpush1.bf16.msra.mxu1 %v3471_v21  ;;  %v3563_v20 = vld [vmem:[#allocation4 + $0x1ec] ss:$16 sps:$4 sm:$0xff]   ;;  %v3558_v21 = vld [vmem:[#allocation4 + $0x1e0] ss:$16 sps:$4 sm:$0xff]  }
  0xcf   :  { %648 = vmatprep.subr.bf16.mxu0 %v3476_v22  ;;  %689 = vmatprep.subr.bf16.mxu1 %v3479_v23  ;;  %v3561_v22 = vld [vmem:[#allocation4 + $0x1e8] ss:$16 sps:$4 sm:$0xff]   ;;  %v3026_v23 = vcombine.low %v4212_v19, %v4212_v19  ;;  %v3583_v19 = vld [vmem:[#allocation6 + $0x4c] ss:$16 sps:$4 sm:$0xff]  }
  0xd0   :  { %678 = vmatprep.mubr.bf16.mxu0 %v3027_v28  ;;  %719 = vmatprep.mubr.bf16.mxu1 %v3027_v28  ;;  %v3574_v28 = vld [vmem:[#allocation6 + $0x24] ss:$16 sps:$4 sm:$0xff]  }
  0xd2   :  { %649 = vmatpush1.bf16.msra.mxu0 %v3474_v26  ;;  %690 = vmatpush1.bf16.msra.mxu1 %v3477_v27  ;;  %v3569_v26 = vld [vmem:[#allocation6 + $0x8] ss:$16 sps:$4 sm:$0xff]   ;;  %v3571_v27 = vld [vmem:[#allocation6 + $0xc] ss:$16 sps:$4 sm:$0xff]  }
  0xd3   :  { %650 = vmatprep.subr.bf16.mxu0 %v3482_v29  ;;  %691 = vmatprep.subr.bf16.mxu1 %v3485_v30  ;;  %v3577_v29 = vld [vmem:[#allocation6 + $0x2c] ss:$16 sps:$4 sm:$0xff]   ;;  %v3572_v30 = vld [vmem:[#allocation6 + $0x20] ss:$16 sps:$4 sm:$0xff]  }
  0xd6   :  { %651 = vmatpush1.bf16.msra.mxu0 %v3480_v31  ;;  %692 = vmatpush1.bf16.msra.mxu1 %v3483_v32  ;;  %v3575_v31 = vld [vmem:[#allocation6 + $0x28] ss:$16 sps:$4 sm:$0xff]   ;;  %v3580_v32 = vld [vmem:[#allocation6 + $0x44] ss:$16 sps:$4 sm:$0xff]  }
  0xd7   :  { %652 = vmatprep.subr.bf16.mxu0 %v3488_v33  ;;  %693 = vmatprep.subr.bf16.mxu1 %v3491_v34  ;;  %v3578_v33 = vld [vmem:[#allocation6 + $0x40] ss:$16 sps:$4 sm:$0xff]   ;;  %v3581_v34 = vld [vmem:[#allocation6 + $0x48] ss:$16 sps:$4 sm:$0xff]  }
  0xda   :  { %653 = vmatpush1.bf16.msra.mxu0 %v3486_v35  ;;  %694 = vmatpush1.bf16.msra.mxu1 %v3489_v36  ;;  %v3586_v35 = vld [vmem:[#allocation6 + $0x64] ss:$16 sps:$4 sm:$0xff]   ;;  %v3589_v36 = vld [vmem:[#allocation6 + $0x6c] ss:$16 sps:$4 sm:$0xff]  }
  0xdb   :  { %654 = vmatprep.subr.bf16.mxu0 %v3494_v37  ;;  %695 = vmatprep.subr.bf16.mxu1 %v3497_v38  ;;  %v3584_v37 = vld [vmem:[#allocation6 + $0x60] ss:$16 sps:$4 sm:$0xff]   ;;  %v3587_v38 = vld [vmem:[#allocation6 + $0x68] ss:$16 sps:$4 sm:$0xff]  }
  0xde   :  { %655 = vmatpush1.bf16.msra.mxu0 %v3492_v39  ;;  %696 = vmatpush1.bf16.msra.mxu1 %v3495_v40  ;;  %v3592_v39 = vld [vmem:[#allocation6 + $0x84] ss:$16 sps:$4 sm:$0xff]   ;;  %v3595_v40 = vld [vmem:[#allocation6 + $0x8c] ss:$16 sps:$4 sm:$0xff]  }
  0xdf   :  { %656 = vmatprep.subr.bf16.mxu0 %v3500_v41  ;;  %697 = vmatprep.subr.bf16.mxu1 %v3503_v42  ;;  %v3590_v41 = vld [vmem:[#allocation6 + $0x80] ss:$16 sps:$4 sm:$0xff]   ;;  %v3593_v42 = vld [vmem:[#allocation6 + $0x88] ss:$16 sps:$4 sm:$0xff]  }
  0xe2   :  { %657 = vmatpush1.bf16.msra.mxu0 %v3498_v43  ;;  %698 = vmatpush1.bf16.msra.mxu1 %v3501_v44  ;;  %v3598_v43 = vld [vmem:[#allocation6 + $0xa4] ss:$16 sps:$4 sm:$0xff]   ;;  %v3601_v44 = vld [vmem:[#allocation6 + $0xac] ss:$16 sps:$4 sm:$0xff]  }
  0xe3   :  { %658 = vmatprep.subr.bf16.mxu0 %v3506_v45  ;;  %699 = vmatprep.subr.bf16.mxu1 %v3509_v46  ;;  %v3596_v45 = vld [vmem:[#allocation6 + $0xa0] ss:$16 sps:$4 sm:$0xff]   ;;  %v3599_v46 = vld [vmem:[#allocation6 + $0xa8] ss:$16 sps:$4 sm:$0xff]  }
  0xe6   :  { %659 = vmatpush1.bf16.msra.mxu0 %v3504_v47  ;;  %700 = vmatpush1.bf16.msra.mxu1 %v3507_v48  ;;  %v3604_v47 = vld [vmem:[#allocation6 + $0xc4] ss:$16 sps:$4 sm:$0xff]   ;;  %v3607_v48 = vld [vmem:[#allocation6 + $0xcc] ss:$16 sps:$4 sm:$0xff]  }
  0xe7   :  { %660 = vmatprep.subr.bf16.mxu0 %v3512_v49  ;;  %701 = vmatprep.subr.bf16.mxu1 %v3515_v50  ;;  %v3602_v49 = vld [vmem:[#allocation6 + $0xc0] ss:$16 sps:$4 sm:$0xff]   ;;  %v3605_v50 = vld [vmem:[#allocation6 + $0xc8] ss:$16 sps:$4 sm:$0xff]  }
  0xea   :  { %661 = vmatpush1.bf16.msra.mxu0 %v3510_v51  ;;  %702 = vmatpush1.bf16.msra.mxu1 %v3513_v52  ;;  %v3610_v51 = vld [vmem:[#allocation6 + $0xe4] ss:$16 sps:$4 sm:$0xff]   ;;  %v3613_v52 = vld [vmem:[#allocation6 + $0xec] ss:$16 sps:$4 sm:$0xff]  }
  0xeb   :  { %662 = vmatprep.subr.bf16.mxu0 %v3518_v53  ;;  %703 = vmatprep.subr.bf16.mxu1 %v3521_v54  ;;  %v3608_v53 = vld [vmem:[#allocation6 + $0xe0] ss:$16 sps:$4 sm:$0xff]   ;;  %v3611_v54 = vld [vmem:[#allocation6 + $0xe8] ss:$16 sps:$4 sm:$0xff]  }
  0xee   :  { %663 = vmatpush1.bf16.msra.mxu0 %v3516_v55  ;;  %704 = vmatpush1.bf16.msra.mxu1 %v3519_v56  ;;  %v3616_v55 = vld [vmem:[#allocation6 + $0x104] ss:$16 sps:$4 sm:$0xff]   ;;  %v3619_v56 = vld [vmem:[#allocation6 + $0x10c] ss:$16 sps:$4 sm:$0xff]  }
  0xef   :  { %664 = vmatprep.subr.bf16.mxu0 %v3524_v57  ;;  %705 = vmatprep.subr.bf16.mxu1 %v3527_v58  ;;  %v3614_v57 = vld [vmem:[#allocation6 + $0x100] ss:$16 sps:$4 sm:$0xff]   ;;  %v3617_v58 = vld [vmem:[#allocation6 + $0x108] ss:$16 sps:$4 sm:$0xff]  }
  0xf2   :  { %665 = vmatpush1.bf16.msra.mxu0 %v3522_v59  ;;  %706 = vmatpush1.bf16.msra.mxu1 %v3525_v60  ;;  %v3622_v59 = vld [vmem:[#allocation6 + $0x124] ss:$16 sps:$4 sm:$0xff]   ;;  %v3625_v60 = vld [vmem:[#allocation6 + $0x12c] ss:$16 sps:$4 sm:$0xff]  }
  0xf3   :  { %666 = vmatprep.subr.bf16.mxu0 %v3530_v61  ;;  %707 = vmatprep.subr.bf16.mxu1 %v3533_v62  ;;  %v3620_v61 = vld [vmem:[#allocation6 + $0x120] ss:$16 sps:$4 sm:$0xff]   ;;  %v3623_v62 = vld [vmem:[#allocation6 + $0x128] ss:$16 sps:$4 sm:$0xff]  }
  0xf6   :  { %667 = vmatpush1.bf16.msra.mxu0 %v3528_v63  ;;  %708 = vmatpush1.bf16.msra.mxu1 %v3531_v0  ;;  %v3628_v63 = vld [vmem:[#allocation6 + $0x144] ss:$16 sps:$4 sm:$0xff]   ;;  %v3631_v0 = vld [vmem:[#allocation6 + $0x14c] ss:$16 sps:$4 sm:$0xff]  }
  0xf7   :  { %668 = vmatprep.subr.bf16.mxu0 %v3536_v1  ;;  %709 = vmatprep.subr.bf16.mxu1 %v3539_v2  ;;  %v3626_v1 = vld [vmem:[#allocation6 + $0x140] ss:$16 sps:$4 sm:$0xff]   ;;  %v3629_v2 = vld [vmem:[#allocation6 + $0x148] ss:$16 sps:$4 sm:$0xff]  }
  0xfa   :  { %669 = vmatpush1.bf16.msra.mxu0 %v3534_v3  ;;  %710 = vmatpush1.bf16.msra.mxu1 %v3537_v4  ;;  %v3634_v3 = vld [vmem:[#allocation6 + $0x164] ss:$16 sps:$4 sm:$0xff]   ;;  %v3637_v4 = vld [vmem:[#allocation6 + $0x16c] ss:$16 sps:$4 sm:$0xff]  }
  0xfb   :  { %670 = vmatprep.subr.bf16.mxu0 %v3542_v5  ;;  %711 = vmatprep.subr.bf16.mxu1 %v3545_v6  ;;  %v3632_v5 = vld [vmem:[#allocation6 + $0x160] ss:$16 sps:$4 sm:$0xff]   ;;  %v3635_v6 = vld [vmem:[#allocation6 + $0x168] ss:$16 sps:$4 sm:$0xff]  }
  0xfe   :  { %671 = vmatpush1.bf16.msra.mxu0 %v3540_v7  ;;  %712 = vmatpush1.bf16.msra.mxu1 %v3543_v8  ;;  %v3640_v7 = vld [vmem:[#allocation6 + $0x184] ss:$16 sps:$4 sm:$0xff]   ;;  %v3643_v8 = vld [vmem:[#allocation6 + $0x18c] ss:$16 sps:$4 sm:$0xff]  }
  0xff   :  { %672 = vmatprep.subr.bf16.mxu0 %v3548_v9  ;;  %713 = vmatprep.subr.bf16.mxu1 %v3551_v10  ;;  %v3638_v9 = vld [vmem:[#allocation6 + $0x180] ss:$16 sps:$4 sm:$0xff]   ;;  %v3641_v10 = vld [vmem:[#allocation6 + $0x188] ss:$16 sps:$4 sm:$0xff]  }
 0x102   :  { %673 = vmatpush1.bf16.msra.mxu0 %v3546_v11  ;;  %714 = vmatpush1.bf16.msra.mxu1 %v3549_v12  ;;  %v3646_v11 = vld [vmem:[#allocation6 + $0x1a4] ss:$16 sps:$4 sm:$0xff]   ;;  %v3649_v12 = vld [vmem:[#allocation6 + $0x1ac] ss:$16 sps:$4 sm:$0xff]  }
 0x103   :  { %674 = vmatprep.subr.bf16.mxu0 %v3554_v13  ;;  %715 = vmatprep.subr.bf16.mxu1 %v3557_v14  ;;  %v3644_v13 = vld [vmem:[#allocation6 + $0x1a0] ss:$16 sps:$4 sm:$0xff]   ;;  %v3647_v14 = vld [vmem:[#allocation6 + $0x1a8] ss:$16 sps:$4 sm:$0xff]  }
 0x106   :  { %675 = vmatpush1.bf16.msra.mxu0 %v3552_v15  ;;  %716 = vmatpush1.bf16.msra.mxu1 %v3555_v16  ;;  %v3652_v15 = vld [vmem:[#allocation6 + $0x1c4] ss:$16 sps:$4 sm:$0xff]   ;;  %v3655_v16 = vld [vmem:[#allocation6 + $0x1cc] ss:$16 sps:$4 sm:$0xff]  }
 0x107   :  { %676 = vmatprep.subr.bf16.mxu0 %v3560_v18  ;;  %717 = vmatprep.subr.bf16.mxu1 %v3563_v20  ;;  %v3650_v18 = vld [vmem:[#allocation6 + $0x1c0] ss:$16 sps:$4 sm:$0xff]   ;;  %v3653_v20 = vld [vmem:[#allocation6 + $0x1c8] ss:$16 sps:$4 sm:$0xff]  }
 0x10a   :  { %677 = vmatpush1.bf16.msra.mxu0 %v3558_v21  ;;  %718 = vmatpush1.bf16.msra.mxu1 %v3561_v22  ;;  %v3658_v21 = vld [vmem:[#allocation6 + $0x1e4] ss:$16 sps:$4 sm:$0xff]   ;;  %v3661_v22 = vld [vmem:[#allocation6 + $0x1ec] ss:$16 sps:$4 sm:$0xff]  }
 0x10b   :  { %1530 = vmatprep.subr.bf16.mxu0 %v3568_v25  ;;  %1612 = vmatprep.subr.bf16.mxu1 %v3571_v27  ;;  %v3664_v25 = vld [vmem:[#allocation6 + $0x204] ss:$16 sps:$4 sm:$0xff]  }
 0x10d   :  { %679 = vmatmul.mubr.bf16.vlgmr.msra.gmra.mrb[4].mxu0 %v3026_v23  ;;  %720 = vmatmul.mubr.bf16.vlgmr.msra.gmra.mrb[4].mxu1 %v3026_v23  ;;  %v3656_v23 = vld [vmem:[#allocation6 + $0x1e0] ss:$16 sps:$4 sm:$0xff]  }
 0x10e   :  { %1531 = vmatpush1.bf16.msra.mxu0 %v3566_v24  ;;  %1613 = vmatpush1.bf16.msra.mxu1 %v3569_v26  ;;  %v3659_v24 = vld [vmem:[#allocation6 + $0x1e8] ss:$16 sps:$4 sm:$0xff]   ;;  %v3667_v26 = vld [vmem:[#allocation6 + $0x20c] ss:$16 sps:$4 sm:$0xff]  }
 0x10f   :  { %1532 = vmatprep.subr.bf16.mxu0 %v3574_v28  ;;  %1614 = vmatprep.subr.bf16.mxu1 %v3577_v29 }
 0x112   :  { %1533 = vmatpush1.bf16.msra.mxu0 %v3572_v30  ;;  %1615 = vmatpush1.bf16.msra.mxu1 %v3575_v31 }
 0x113   :  { %1534 = vmatprep.subr.bf16.mxu0 %v3580_v32  ;;  %1616 = vmatprep.subr.bf16.mxu1 %v3583_v19 }
 0x116   :  { %1535 = vmatpush1.bf16.msra.mxu0 %v3578_v33  ;;  %1617 = vmatpush1.bf16.msra.mxu1 %v3581_v34 }
 0x117   :  { %1536 = vmatprep.subr.bf16.mxu0 %v3586_v35  ;;  %1618 = vmatprep.subr.bf16.mxu1 %v3589_v36 }
 0x11a   :  { %1537 = vmatpush1.bf16.msra.mxu0 %v3584_v37  ;;  %1619 = vmatpush1.bf16.msra.mxu1 %v3587_v38 }
 0x11b   :  { %1538 = vmatprep.subr.bf16.mxu0 %v3592_v39  ;;  %1620 = vmatprep.subr.bf16.mxu1 %v3595_v40 }
 0x11e   :  { %1539 = vmatpush1.bf16.msra.mxu0 %v3590_v41  ;;  %1621 = vmatpush1.bf16.msra.mxu1 %v3593_v42 }
 0x11f   :  { %1540 = vmatprep.subr.bf16.mxu0 %v3598_v43  ;;  %1622 = vmatprep.subr.bf16.mxu1 %v3601_v44 }
 0x122   :  { %1541 = vmatpush1.bf16.msra.mxu0 %v3596_v45  ;;  %1623 = vmatpush1.bf16.msra.mxu1 %v3599_v46 }
 0x123   :  { %1542 = vmatprep.subr.bf16.mxu0 %v3604_v47  ;;  %1624 = vmatprep.subr.bf16.mxu1 %v3607_v48 }
 0x126   :  { %1543 = vmatpush1.bf16.msra.mxu0 %v3602_v49  ;;  %1625 = vmatpush1.bf16.msra.mxu1 %v3605_v50  ;;  %v3662_v49 = vld [vmem:[#allocation6 + $0x200] ss:$16 sps:$4 sm:$0xff]   ;;  %v3665_v50 = vld [vmem:[#allocation6 + $0x208] ss:$16 sps:$4 sm:$0xff]  }
 0x127   :  { %1544 = vmatprep.subr.bf16.mxu0 %v3610_v51  ;;  %1626 = vmatprep.subr.bf16.mxu1 %v3613_v52  ;;  %v3670_v52 = vld [vmem:[#allocation6 + $0x224] ss:$16 sps:$4 sm:$0xff]  }
 0x12a   :  { %1545 = vmatpush1.bf16.msra.mxu0 %v3608_v53  ;;  %1627 = vmatpush1.bf16.msra.mxu1 %v3611_v54  ;;  %v3673_v53 = vld [vmem:[#allocation6 + $0x22c] ss:$16 sps:$4 sm:$0xff]  }
 0x12b   :  { %1546 = vmatprep.subr.bf16.mxu0 %v3616_v55  ;;  %1628 = vmatprep.subr.bf16.mxu1 %v3619_v56  ;;  %v3668_v55 = vld [vmem:[#allocation6 + $0x220] ss:$16 sps:$4 sm:$0xff]   ;;  %v3671_v56 = vld [vmem:[#allocation6 + $0x228] ss:$16 sps:$4 sm:$0xff]  }
 0x12e   :  { %1547 = vmatpush1.bf16.msra.mxu0 %v3614_v57  ;;  %1629 = vmatpush1.bf16.msra.mxu1 %v3617_v58  ;;  %v3676_v57 = vld [vmem:[#allocation6 + $0x244] ss:$16 sps:$4 sm:$0xff]   ;;  %v3679_v58 = vld [vmem:[#allocation6 + $0x24c] ss:$16 sps:$4 sm:$0xff]  }
 0x12f   :  { %1548 = vmatprep.subr.bf16.mxu0 %v3622_v59  ;;  %1630 = vmatprep.subr.bf16.mxu1 %v3625_v60  ;;  %v3674_v59 = vld [vmem:[#allocation6 + $0x240] ss:$16 sps:$4 sm:$0xff]   ;;  %v3677_v60 = vld [vmem:[#allocation6 + $0x248] ss:$16 sps:$4 sm:$0xff]  }
 0x132   :  { %1549 = vmatpush1.bf16.msra.mxu0 %v3620_v61  ;;  %1631 = vmatpush1.bf16.msra.mxu1 %v3623_v62  ;;  %v3682_v61 = vld [vmem:[#allocation6 + $0x264] ss:$16 sps:$4 sm:$0xff]   ;;  %v3685_v62 = vld [vmem:[#allocation6 + $0x26c] ss:$16 sps:$4 sm:$0xff]  }
 0x133   :  { %1550 = vmatprep.subr.bf16.mxu0 %v3628_v63  ;;  %1632 = vmatprep.subr.bf16.mxu1 %v3631_v0  ;;  %v3680_v63 = vld [vmem:[#allocation6 + $0x260] ss:$16 sps:$4 sm:$0xff]   ;;  %v3683_v0 = vld [vmem:[#allocation6 + $0x268] ss:$16 sps:$4 sm:$0xff]  }
 0x136   :  { %1551 = vmatpush1.bf16.msra.mxu0 %v3626_v1  ;;  %1633 = vmatpush1.bf16.msra.mxu1 %v3629_v2  ;;  %v3688_v1 = vld [vmem:[#allocation6 + $0x284] ss:$16 sps:$4 sm:$0xff]   ;;  %v3691_v2 = vld [vmem:[#allocation6 + $0x28c] ss:$16 sps:$4 sm:$0xff]  }
 0x137   :  { %1552 = vmatprep.subr.bf16.mxu0 %v3634_v3  ;;  %1634 = vmatprep.subr.bf16.mxu1 %v3637_v4  ;;  %v3686_v3 = vld [vmem:[#allocation6 + $0x280] ss:$16 sps:$4 sm:$0xff]   ;;  %v3689_v4 = vld [vmem:[#allocation6 + $0x288] ss:$16 sps:$4 sm:$0xff]  }
 0x13a   :  { %1553 = vmatpush1.bf16.msra.mxu0 %v3632_v5  ;;  %1635 = vmatpush1.bf16.msra.mxu1 %v3635_v6  ;;  %v3694_v5 = vld [vmem:[#allocation6 + $0x2a4] ss:$16 sps:$4 sm:$0xff]   ;;  %v3697_v6 = vld [vmem:[#allocation6 + $0x2ac] ss:$16 sps:$4 sm:$0xff]  }
 0x13b   :  { %1554 = vmatprep.subr.bf16.mxu0 %v3640_v7  ;;  %1636 = vmatprep.subr.bf16.mxu1 %v3643_v8  ;;  %v3692_v7 = vld [vmem:[#allocation6 + $0x2a0] ss:$16 sps:$4 sm:$0xff]   ;;  %v3695_v8 = vld [vmem:[#allocation6 + $0x2a8] ss:$16 sps:$4 sm:$0xff]  }
 0x13e   :  { %1555 = vmatpush1.bf16.msra.mxu0 %v3638_v9  ;;  %1637 = vmatpush1.bf16.msra.mxu1 %v3641_v10  ;;  %v3700_v9 = vld [vmem:[#allocation6 + $0x2c4] ss:$16 sps:$4 sm:$0xff]   ;;  %v3703_v10 = vld [vmem:[#allocation6 + $0x2cc] ss:$16 sps:$4 sm:$0xff]  }
 0x13f   :  { %1556 = vmatprep.subr.bf16.mxu0 %v3646_v11  ;;  %1638 = vmatprep.subr.bf16.mxu1 %v3649_v12  ;;  %v3698_v11 = vld [vmem:[#allocation6 + $0x2c0] ss:$16 sps:$4 sm:$0xff]   ;;  %v3701_v12 = vld [vmem:[#allocation6 + $0x2c8] ss:$16 sps:$4 sm:$0xff]  }
 0x142   :  { %1557 = vmatpush1.bf16.msra.mxu0 %v3644_v13  ;;  %1639 = vmatpush1.bf16.msra.mxu1 %v3647_v14  ;;  %v3706_v13 = vld [vmem:[#allocation6 + $0x2e4] ss:$16 sps:$4 sm:$0xff]   ;;  %v3709_v14 = vld [vmem:[#allocation6 + $0x2ec] ss:$16 sps:$4 sm:$0xff]  }
 0x143   :  { %1558 = vmatprep.subr.bf16.mxu0 %v3652_v15  ;;  %1640 = vmatprep.subr.bf16.mxu1 %v3655_v16  ;;  %v3704_v15 = vld [vmem:[#allocation6 + $0x2e0] ss:$16 sps:$4 sm:$0xff]   ;;  %v3707_v16 = vld [vmem:[#allocation6 + $0x2e8] ss:$16 sps:$4 sm:$0xff]  }
 0x146   :  { %1559 = vmatpush1.bf16.msra.mxu0 %v3650_v18  ;;  %1641 = vmatpush1.bf16.msra.mxu1 %v3653_v20  ;;  %v3712_v18 = vld [vmem:[#allocation6 + $0x304] ss:$16 sps:$4 sm:$0xff]   ;;  %v3715_v20 = vld [vmem:[#allocation6 + $0x30c] ss:$16 sps:$4 sm:$0xff]  }
 0x147   :  { %1560 = vmatprep.subr.bf16.mxu0 %v3658_v21  ;;  %1642 = vmatprep.subr.bf16.mxu1 %v3661_v22  ;;  %v3710_v21 = vld [vmem:[#allocation6 + $0x300] ss:$16 sps:$4 sm:$0xff]   ;;  %v3713_v22 = vld [vmem:[#allocation6 + $0x308] ss:$16 sps:$4 sm:$0xff]  }
 0x14a   :  { %1561 = vmatpush1.bf16.msra.mxu0 %v3656_v23  ;;  %1643 = vmatpush1.bf16.msra.mxu1 %v3659_v24  ;;  %v3718_v23 = vld [vmem:[#allocation6 + $0x324] ss:$16 sps:$4 sm:$0xff]   ;;  %v3721_v24 = vld [vmem:[#allocation6 + $0x32c] ss:$16 sps:$4 sm:$0xff]  }
 0x14b   :  { %1571 = vmatprep.subr.bf16.mxu0 %v3664_v25  ;;  %1653 = vmatprep.subr.bf16.mxu1 %v3667_v26  ;;  %v3716_v25 = vld [vmem:[#allocation6 + $0x320] ss:$16 sps:$4 sm:$0xff]   ;;  %v3719_v26 = vld [vmem:[#allocation6 + $0x328] ss:$16 sps:$4 sm:$0xff]  }
 0x1a0   :  { %v243_v27 = vpop.f32.mrb[0].mxu0  ;;  %v314_v28 = vpop.f32.mrb[0].mxu1 }
 0x1a1   :  { %v245_v29 = vpop.f32.mrb[1].mxu0  ;;  %v316_v30 = vpop.f32.mrb[1].mxu1 }
 0x1e0   :  { %v680_v31 = vpop.f32.mrb[4].mxu0  ;;  %v721_v32 = vpop.f32.mrb[4].mxu1 }
 0x1e1   :  { %v681_v19 = vadd.f32 %v680_v31, %v243_v27  ;;  %v4218_v33 = vadd.f32 %v721_v32, %v314_v28  ;;  %v682_v34 = vpop.f32.mrb[5].mxu0  ;;  %v723_v35 = vpop.f32.mrb[5].mxu1  ;;  %v3724_v27 = vld [vmem:[#allocation6 + $0x344] ss:$16 sps:$4 sm:$0xff]   ;;  %v3727_v28 = vld [vmem:[#allocation6 + $0x34c] ss:$16 sps:$4 sm:$0xff]  }
 0x1e2   :  { %v683_v36 = vadd.f32 %v682_v34, %v245_v29  ;;  %v724_v37 = vadd.f32 %v723_v35, %v316_v30  ;;  %v684_v38 = vpop.f32.mrb[6].mxu0  ;;  %v725_v39 = vpop.f32.mrb[6].mxu1  ;;  %v3722_v29 = vld [vmem:[#allocation6 + $0x340] ss:$16 sps:$4 sm:$0xff]   ;;  %v3725_v30 = vld [vmem:[#allocation6 + $0x348] ss:$16 sps:$4 sm:$0xff]  }
 0x1e3   :  { %v728_v40 = vmul.f32 0.2, %v681_v19  ;;  %v685_v41 = vpop.f32.mrb[7].mxu0  ;;  %v726_v42 = vpop.f32.mrb[7].mxu1  ;;  %v3730_v31 = vld [vmem:[#allocation6 + $0x364] ss:$16 sps:$4 sm:$0xff]  }
 0x1e4   :  { %v729_v43 = vmul.f32 0.2, %v683_v36  ;;  %v731_v44 = vmul.f32 0.2, %v724_v37  ;;  %v3733_v32 = vld [vmem:[#allocation6 + $0x36c] ss:$16 sps:$4 sm:$0xff]  }
 0x1e5   :  { %v732_v45 = vmax.f32 %v681_v19, %v728_v40  ;;  %v3728_v19 = vld [vmem:[#allocation6 + $0x360] ss:$16 sps:$4 sm:$0xff]   ;;  %v3731_v34 = vld [vmem:[#allocation6 + $0x368] ss:$16 sps:$4 sm:$0xff]   ;;  %v3736_v35 = vld [vmem:[#allocation6 + $0x384] ss:$16 sps:$4 sm:$0xff]  }
 0x1e6   :  { %v733_v46 = vmax.f32 %v683_v36, %v729_v43  ;;  %v735_v47 = vmax.f32 %v724_v37, %v731_v44  ;;  %v3739_v36 = vld [vmem:[#allocation6 + $0x38c] ss:$16 sps:$4 sm:$0xff]   ;;  %v3734_v37 = vld [vmem:[#allocation6 + $0x380] ss:$16 sps:$4 sm:$0xff]   ;;  %v3737_v38 = vld [vmem:[#allocation6 + $0x388] ss:$16 sps:$4 sm:$0xff]  }
 0x1e7   :  { %v736_v51 = vpack.c.bf16 %v732_v45, %v732_v45  ;;  %v3742_v39 = vld [vmem:[#allocation6 + $0x3a4] ss:$16 sps:$4 sm:$0xff]   ;;  %v3745_v40 = vld [vmem:[#allocation6 + $0x3ac] ss:$16 sps:$4 sm:$0xff]   ;;  %v3740_v41 = vld [vmem:[#allocation6 + $0x3a0] ss:$16 sps:$4 sm:$0xff]  }
 0x1e8   :  { %v737_v48 = vpack.c.bf16 %v733_v46, %v733_v46  ;;  %v739_v54 = vpack.c.bf16 %v735_v47, %v735_v47  ;;  %v3743_v42 = vld [vmem:[#allocation6 + $0x3a8] ss:$16 sps:$4 sm:$0xff]   ;;  %v3748_v43 = vld [vmem:[#allocation6 + $0x3c4] ss:$16 sps:$4 sm:$0xff]   ;;  %v3751_v44 = vld [vmem:[#allocation6 + $0x3cc] ss:$16 sps:$4 sm:$0xff]  }
 0x1e9   :  { %v3746_v45 = vld [vmem:[#allocation6 + $0x3c0] ss:$16 sps:$4 sm:$0xff]   ;;  %v3749_v46 = vld [vmem:[#allocation6 + $0x3c8] ss:$16 sps:$4 sm:$0xff]   ;;  %v730_v47 = vmul.f32 0.2, %v4218_v33 }
 0x1ea   :  { %1562 = vmatprep.mubr.bf16.mxu0 %v737_v48  ;;  %1644 = vmatprep.mubr.bf16.mxu1 %v737_v48  ;;  %v3754_v48 = vld [vmem:[#allocation6 + $0x3e4] ss:$16 sps:$4 sm:$0xff]  }
 0x1eb   :  { %1563 = vmatmul.mubr.bf16.vlgmr.msra.gmra.mrb[8].mxu0 %v736_v51  ;;  %1645 = vmatmul.mubr.bf16.vlgmr.msra.gmra.mrb[8].mxu1 %v736_v51  ;;  %v3755_v51 = vld [vmem:[#allocation6 + $0x3e8] ss:$16 sps:$4 sm:$0xff]  }
 0x1ec   :  { %1572 = vmatpush1.bf16.msra.mxu0 %v3662_v49  ;;  %1654 = vmatpush1.bf16.msra.mxu1 %v3665_v50  ;;  %v3757_v49 = vld [vmem:[#allocation6 + $0x3ec] ss:$16 sps:$4 sm:$0xff]   ;;  %v3752_v50 = vld [vmem:[#allocation6 + $0x3e0] ss:$16 sps:$4 sm:$0xff]  }
 0x1ed   :  { %1603 = vmatprep.mubr.bf16.mxu0 %v739_v54  ;;  %1685 = vmatprep.mubr.bf16.mxu1 %v739_v54  ;;  %v3763_v54 = vld [vmem:[#allocation7 + $0xc] ss:$16 sps:$4 sm:$0xff]  }
 0x1ee   :  { %1573 = vmatprep.subr.bf16.mxu0 %v3670_v52  ;;  %1655 = vmatprep.subr.bf16.mxu1 %v3673_v53  ;;  %v734_v52 = vmax.f32 %v4218_v33, %v730_v47  ;;  %v3760_v53 = vld [vmem:[#allocation7 + $0x4] ss:$16 sps:$4 sm:$0xff]  }
 0x1ef   :  { %v3772_v33 = vld [vmem:[#allocation7 + $0x44] ss:$16 sps:$4 sm:$0xff]  }
 0x1f0   :  { %1574 = vmatpush1.bf16.msra.mxu0 %v3668_v55  ;;  %1656 = vmatpush1.bf16.msra.mxu1 %v3671_v56  ;;  %v3758_v55 = vld [vmem:[#allocation7] ss:$16 sps:$4 sm:$0xff]   ;;  %v3761_v56 = vld [vmem:[#allocation7 + $0x8] ss:$16 sps:$4 sm:$0xff]   ;;  %v3844_v47 = vld [vmem:[#allocation7 + $0x1c4] ss:$16 sps:$4 sm:$0xff]  }
 0x1f1   :  { %1575 = vmatprep.subr.bf16.mxu0 %v3676_v57  ;;  %1657 = vmatprep.subr.bf16.mxu1 %v3679_v58  ;;  %v738_v57 = vpack.c.bf16 %v734_v52, %v734_v52  ;;  %v3766_v58 = vld [vmem:[#allocation7 + $0x24] ss:$16 sps:$4 sm:$0xff]   ;;  %v3853_v52 = vld [vmem:[#allocation7 + $0x1ec] ss:$16 sps:$4 sm:$0xff]  }
 0x1f4   :  { %1576 = vmatpush1.bf16.msra.mxu0 %v3674_v59  ;;  %1658 = vmatpush1.bf16.msra.mxu1 %v3677_v60  ;;  %v3769_v59 = vld [vmem:[#allocation7 + $0x2c] ss:$16 sps:$4 sm:$0xff]   ;;  %v3764_v60 = vld [vmem:[#allocation7 + $0x20] ss:$16 sps:$4 sm:$0xff]  }
 0x1f5   :  { %1577 = vmatprep.subr.bf16.mxu0 %v3682_v61  ;;  %1659 = vmatprep.subr.bf16.mxu1 %v3685_v62  ;;  %v3767_v61 = vld [vmem:[#allocation7 + $0x28] ss:$16 sps:$4 sm:$0xff]   ;;  %v3775_v62 = vld [vmem:[#allocation7 + $0x4c] ss:$16 sps:$4 sm:$0xff]  }
 0x1f8   :  { %1578 = vmatpush1.bf16.msra.mxu0 %v3680_v63  ;;  %1660 = vmatpush1.bf16.msra.mxu1 %v3683_v0  ;;  %v3770_v63 = vld [vmem:[#allocation7 + $0x40] ss:$16 sps:$4 sm:$0xff]   ;;  %v3773_v0 = vld [vmem:[#allocation7 + $0x48] ss:$16 sps:$4 sm:$0xff]  }
 0x1f9   :  { %1579 = vmatprep.subr.bf16.mxu0 %v3688_v1  ;;  %1661 = vmatprep.subr.bf16.mxu1 %v3691_v2  ;;  %v3778_v1 = vld [vmem:[#allocation7 + $0x64] ss:$16 sps:$4 sm:$0xff]   ;;  %v3781_v2 = vld [vmem:[#allocation7 + $0x6c] ss:$16 sps:$4 sm:$0xff]  }
 0x1fc   :  { %1580 = vmatpush1.bf16.msra.mxu0 %v3686_v3  ;;  %1662 = vmatpush1.bf16.msra.mxu1 %v3689_v4  ;;  %v3776_v3 = vld [vmem:[#allocation7 + $0x60] ss:$16 sps:$4 sm:$0xff]   ;;  %v3779_v4 = vld [vmem:[#allocation7 + $0x68] ss:$16 sps:$4 sm:$0xff]  }
 0x1fd   :  { %1581 = vmatprep.subr.bf16.mxu0 %v3694_v5  ;;  %1663 = vmatprep.subr.bf16.mxu1 %v3697_v6  ;;  %v3784_v5 = vld [vmem:[#allocation7 + $0x84] ss:$16 sps:$4 sm:$0xff]   ;;  %v3787_v6 = vld [vmem:[#allocation7 + $0x8c] ss:$16 sps:$4 sm:$0xff]  }
 0x200   :  { %1582 = vmatpush1.bf16.msra.mxu0 %v3692_v7  ;;  %1664 = vmatpush1.bf16.msra.mxu1 %v3695_v8  ;;  %v3782_v7 = vld [vmem:[#allocation7 + $0x80] ss:$16 sps:$4 sm:$0xff]   ;;  %v3785_v8 = vld [vmem:[#allocation7 + $0x88] ss:$16 sps:$4 sm:$0xff]  }
 0x201   :  { %1583 = vmatprep.subr.bf16.mxu0 %v3700_v9  ;;  %1665 = vmatprep.subr.bf16.mxu1 %v3703_v10  ;;  %v3790_v9 = vld [vmem:[#allocation7 + $0xa4] ss:$16 sps:$4 sm:$0xff]   ;;  %v3793_v10 = vld [vmem:[#allocation7 + $0xac] ss:$16 sps:$4 sm:$0xff]  }
 0x204   :  { %1584 = vmatpush1.bf16.msra.mxu0 %v3698_v11  ;;  %1666 = vmatpush1.bf16.msra.mxu1 %v3701_v12  ;;  %v3788_v11 = vld [vmem:[#allocation7 + $0xa0] ss:$16 sps:$4 sm:$0xff]   ;;  %v3791_v12 = vld [vmem:[#allocation7 + $0xa8] ss:$16 sps:$4 sm:$0xff]  }
 0x205   :  { %1585 = vmatprep.subr.bf16.mxu0 %v3706_v13  ;;  %1667 = vmatprep.subr.bf16.mxu1 %v3709_v14  ;;  %v3796_v13 = vld [vmem:[#allocation7 + $0xc4] ss:$16 sps:$4 sm:$0xff]   ;;  %v3799_v14 = vld [vmem:[#allocation7 + $0xcc] ss:$16 sps:$4 sm:$0xff]  }
 0x208   :  { %1586 = vmatpush1.bf16.msra.mxu0 %v3704_v15  ;;  %1668 = vmatpush1.bf16.msra.mxu1 %v3707_v16  ;;  %v3794_v15 = vld [vmem:[#allocation7 + $0xc0] ss:$16 sps:$4 sm:$0xff]   ;;  %v3797_v16 = vld [vmem:[#allocation7 + $0xc8] ss:$16 sps:$4 sm:$0xff]  }
 0x209   :  { %1587 = vmatprep.subr.bf16.mxu0 %v3712_v18  ;;  %1669 = vmatprep.subr.bf16.mxu1 %v3715_v20  ;;  %v3802_v18 = vld [vmem:[#allocation7 + $0xe4] ss:$16 sps:$4 sm:$0xff]   ;;  %v3805_v20 = vld [vmem:[#allocation7 + $0xec] ss:$16 sps:$4 sm:$0xff]  }
 0x20c   :  { %1588 = vmatpush1.bf16.msra.mxu0 %v3710_v21  ;;  %1670 = vmatpush1.bf16.msra.mxu1 %v3713_v22  ;;  %v3800_v21 = vld [vmem:[#allocation7 + $0xe0] ss:$16 sps:$4 sm:$0xff]   ;;  %v3803_v22 = vld [vmem:[#allocation7 + $0xe8] ss:$16 sps:$4 sm:$0xff]  }
 0x20d   :  { %1589 = vmatprep.subr.bf16.mxu0 %v3718_v23  ;;  %1671 = vmatprep.subr.bf16.mxu1 %v3721_v24  ;;  %v3808_v23 = vld [vmem:[#allocation7 + $0x104] ss:$16 sps:$4 sm:$0xff]   ;;  %v3811_v24 = vld [vmem:[#allocation7 + $0x10c] ss:$16 sps:$4 sm:$0xff]  }
 0x210   :  { %1590 = vmatpush1.bf16.msra.mxu0 %v3716_v25  ;;  %1672 = vmatpush1.bf16.msra.mxu1 %v3719_v26  ;;  %v3806_v25 = vld [vmem:[#allocation7 + $0x100] ss:$16 sps:$4 sm:$0xff]   ;;  %v3809_v26 = vld [vmem:[#allocation7 + $0x108] ss:$16 sps:$4 sm:$0xff]  }
 0x211   :  { %1591 = vmatprep.subr.bf16.mxu0 %v3724_v27  ;;  %1673 = vmatprep.subr.bf16.mxu1 %v3727_v28  ;;  %v3814_v27 = vld [vmem:[#allocation7 + $0x124] ss:$16 sps:$4 sm:$0xff]   ;;  %v3817_v28 = vld [vmem:[#allocation7 + $0x12c] ss:$16 sps:$4 sm:$0xff]  }
 0x214   :  { %1592 = vmatpush1.bf16.msra.mxu0 %v3722_v29  ;;  %1674 = vmatpush1.bf16.msra.mxu1 %v3725_v30  ;;  %v3812_v29 = vld [vmem:[#allocation7 + $0x120] ss:$16 sps:$4 sm:$0xff]   ;;  %v3815_v30 = vld [vmem:[#allocation7 + $0x128] ss:$16 sps:$4 sm:$0xff]  }
 0x215   :  { %1593 = vmatprep.subr.bf16.mxu0 %v3730_v31  ;;  %1675 = vmatprep.subr.bf16.mxu1 %v3733_v32  ;;  %v3820_v31 = vld [vmem:[#allocation7 + $0x144] ss:$16 sps:$4 sm:$0xff]   ;;  %v3823_v32 = vld [vmem:[#allocation7 + $0x14c] ss:$16 sps:$4 sm:$0xff]  }
 0x218   :  { %1594 = vmatpush1.bf16.msra.mxu0 %v3728_v19  ;;  %1676 = vmatpush1.bf16.msra.mxu1 %v3731_v34  ;;  %v3818_v19 = vld [vmem:[#allocation7 + $0x140] ss:$16 sps:$4 sm:$0xff]   ;;  %v3821_v34 = vld [vmem:[#allocation7 + $0x148] ss:$16 sps:$4 sm:$0xff]  }
 0x219   :  { %1595 = vmatprep.subr.bf16.mxu0 %v3736_v35  ;;  %1677 = vmatprep.subr.bf16.mxu1 %v3739_v36  ;;  %v3826_v35 = vld [vmem:[#allocation7 + $0x164] ss:$16 sps:$4 sm:$0xff]   ;;  %v3829_v36 = vld [vmem:[#allocation7 + $0x16c] ss:$16 sps:$4 sm:$0xff]  }
 0x21c   :  { %1596 = vmatpush1.bf16.msra.mxu0 %v3734_v37  ;;  %1678 = vmatpush1.bf16.msra.mxu1 %v3737_v38  ;;  %v3824_v37 = vld [vmem:[#allocation7 + $0x160] ss:$16 sps:$4 sm:$0xff]   ;;  %v3827_v38 = vld [vmem:[#allocation7 + $0x168] ss:$16 sps:$4 sm:$0xff]  }
 0x21d   :  { %1597 = vmatprep.subr.bf16.mxu0 %v3742_v39  ;;  %1679 = vmatprep.subr.bf16.mxu1 %v3745_v40  ;;  %v3832_v39 = vld [vmem:[#allocation7 + $0x184] ss:$16 sps:$4 sm:$0xff]   ;;  %v3835_v40 = vld [vmem:[#allocation7 + $0x18c] ss:$16 sps:$4 sm:$0xff]  }
 0x220   :  { %1598 = vmatpush1.bf16.msra.mxu0 %v3740_v41  ;;  %1680 = vmatpush1.bf16.msra.mxu1 %v3743_v42  ;;  %v3830_v41 = vld [vmem:[#allocation7 + $0x180] ss:$16 sps:$4 sm:$0xff]   ;;  %v3833_v42 = vld [vmem:[#allocation7 + $0x188] ss:$16 sps:$4 sm:$0xff]  }
 0x221   :  { %1599 = vmatprep.subr.bf16.mxu0 %v3748_v43  ;;  %1681 = vmatprep.subr.bf16.mxu1 %v3751_v44  ;;  %v3838_v43 = vld [vmem:[#allocation7 + $0x1a4] ss:$16 sps:$4 sm:$0xff]   ;;  %v3841_v44 = vld [vmem:[#allocation7 + $0x1ac] ss:$16 sps:$4 sm:$0xff]  }
 0x224   :  { %1600 = vmatpush1.bf16.msra.mxu0 %v3746_v45  ;;  %1682 = vmatpush1.bf16.msra.mxu1 %v3749_v46  ;;  %v3836_v45 = vld [vmem:[#allocation7 + $0x1a0] ss:$16 sps:$4 sm:$0xff]   ;;  %v3839_v46 = vld [vmem:[#allocation7 + $0x1a8] ss:$16 sps:$4 sm:$0xff]  }
 0x225   :  { %1601 = vmatprep.subr.bf16.mxu0 %v3754_v48  ;;  %1683 = vmatprep.subr.bf16.mxu1 %v3757_v49  ;;  %v3847_v48 = vld [vmem:[#allocation7 + $0x1cc] ss:$16 sps:$4 sm:$0xff]   ;;  %v3842_v49 = vld [vmem:[#allocation7 + $0x1c0] ss:$16 sps:$4 sm:$0xff]  }
 0x228   :  { %1602 = vmatpush1.bf16.msra.mxu0 %v3752_v50  ;;  %1684 = vmatpush1.bf16.msra.mxu1 %v3755_v51  ;;  %v3845_v50 = vld [vmem:[#allocation7 + $0x1c8] ss:$16 sps:$4 sm:$0xff]   ;;  %v3850_v51 = vld [vmem:[#allocation7 + $0x1e4] ss:$16 sps:$4 sm:$0xff]  }
 0x229   :  { %2496 = vmatprep.subr.bf16.mxu0 %v3760_v53  ;;  %2578 = vmatprep.subr.bf16.mxu1 %v3763_v54  ;;  %v3848_v53 = vld [vmem:[#allocation7 + $0x1e0] ss:$16 sps:$4 sm:$0xff]   ;;  %v3851_v54 = vld [vmem:[#allocation7 + $0x1e8] ss:$16 sps:$4 sm:$0xff]  }
 0x22b   :  { %1604 = vmatmul.mubr.bf16.vlgmr.msra.gmra.mrb[8].mxu0 %v738_v57  ;;  %1686 = vmatmul.mubr.bf16.vlgmr.msra.gmra.mrb[8].mxu1 %v738_v57  ;;  %v4223_v57 = vshrl.u32 %v157_v17, 7 }
 0x22c   :  { %2497 = vmatpush1.bf16.msra.mxu0 %v3758_v55  ;;  %2579 = vmatpush1.bf16.msra.mxu1 %v3761_v56  ;;  %v3856_v55 = vld [vmem:[#allocation7 + $0x204] ss:$16 sps:$4 sm:$0xff]   ;;  %v3859_v56 = vld [vmem:[#allocation7 + $0x20c] ss:$16 sps:$4 sm:$0xff]  }
 0x22d   :  { %2498 = vmatprep.subr.bf16.mxu0 %v3766_v58  ;;  %2580 = vmatprep.subr.bf16.mxu1 %v3769_v59  ;;  %v872_v58 = vsub.s32 0, %v4223_v57  ;;  %v4229_v59 = vld [vmem:[%s4367_s5] sm:$0xf] }
 0x230   :  { %2499 = vmatpush1.bf16.msra.mxu0 %v3764_v60  ;;  %2581 = vmatpush1.bf16.msra.mxu1 %v3767_v61  ;;  %v876_v60 = vsub.s32 1, %v4223_v57  ;;  %v884_v61 = vsub.s32 3, %v4223_v57 }
 0x231   :  { %2500 = vmatprep.subr.bf16.mxu0 %v3772_v33  ;;  %2582 = vmatprep.subr.bf16.mxu1 %v3775_v62  ;;  %v873_v33 = vrot.slane %v4229_v59, %v872_v58 }
 0x232   :  { %v877_v17 = vrot.slane %v4229_v59, %v876_v60  ;;  %v885_v62 = vrot.slane %v4229_v59, %v884_v61 }
 0x234   :  { %2501 = vmatpush1.bf16.msra.mxu0 %v3770_v63  ;;  %2583 = vmatpush1.bf16.msra.mxu1 %v3773_v0 }
 0x235   :  { %2502 = vmatprep.subr.bf16.mxu0 %v3778_v1  ;;  %2584 = vmatprep.subr.bf16.mxu1 %v3781_v2 }
 0x238   :  { %2503 = vmatpush1.bf16.msra.mxu0 %v3776_v3  ;;  %2585 = vmatpush1.bf16.msra.mxu1 %v3779_v4 }
 0x239   :  { %2504 = vmatprep.subr.bf16.mxu0 %v3784_v5  ;;  %2586 = vmatprep.subr.bf16.mxu1 %v3787_v6 }
 0x23c   :  { %2505 = vmatpush1.bf16.msra.mxu0 %v3782_v7  ;;  %2587 = vmatpush1.bf16.msra.mxu1 %v3785_v8 }
 0x23d   :  { %2506 = vmatprep.subr.bf16.mxu0 %v3790_v9  ;;  %2588 = vmatprep.subr.bf16.mxu1 %v3793_v10 }
 0x240   :  { %2507 = vmatpush1.bf16.msra.mxu0 %v3788_v11  ;;  %2589 = vmatpush1.bf16.msra.mxu1 %v3791_v12 }
 0x241   :  { %2508 = vmatprep.subr.bf16.mxu0 %v3796_v13  ;;  %2590 = vmatprep.subr.bf16.mxu1 %v3799_v14 }
 0x244   :  { %2509 = vmatpush1.bf16.msra.mxu0 %v3794_v15  ;;  %2591 = vmatpush1.bf16.msra.mxu1 %v3797_v16 }
 0x245   :  { %2510 = vmatprep.subr.bf16.mxu0 %v3802_v18  ;;  %2592 = vmatprep.subr.bf16.mxu1 %v3805_v20  ;;  %v3854_v18 = vld [vmem:[#allocation7 + $0x200] ss:$16 sps:$4 sm:$0xff]   ;;  %v3857_v20 = vld [vmem:[#allocation7 + $0x208] ss:$16 sps:$4 sm:$0xff]  }
 0x248   :  { %2511 = vmatpush1.bf16.msra.mxu0 %v3800_v21  ;;  %2593 = vmatpush1.bf16.msra.mxu1 %v3803_v22  ;;  %v3862_v22 = vld [vmem:[#allocation7 + $0x224] ss:$16 sps:$4 sm:$0xff]  }
 0x249   :  { %2512 = vmatprep.subr.bf16.mxu0 %v3808_v23  ;;  %2594 = vmatprep.subr.bf16.mxu1 %v3811_v24  ;;  %v3865_v23 = vld [vmem:[#allocation7 + $0x22c] ss:$16 sps:$4 sm:$0xff]  }
 0x24c   :  { %2513 = vmatpush1.bf16.msra.mxu0 %v3806_v25  ;;  %2595 = vmatpush1.bf16.msra.mxu1 %v3809_v26  ;;  %v3860_v25 = vld [vmem:[#allocation7 + $0x220] ss:$16 sps:$4 sm:$0xff]   ;;  %v3863_v26 = vld [vmem:[#allocation7 + $0x228] ss:$16 sps:$4 sm:$0xff]  }
 0x24d   :  { %2514 = vmatprep.subr.bf16.mxu0 %v3814_v27  ;;  %2596 = vmatprep.subr.bf16.mxu1 %v3817_v28  ;;  %v3868_v27 = vld [vmem:[#allocation7 + $0x244] ss:$16 sps:$4 sm:$0xff]   ;;  %v3871_v28 = vld [vmem:[#allocation7 + $0x24c] ss:$16 sps:$4 sm:$0xff]  }
 0x250   :  { %2515 = vmatpush1.bf16.msra.mxu0 %v3812_v29  ;;  %2597 = vmatpush1.bf16.msra.mxu1 %v3815_v30  ;;  %v3866_v29 = vld [vmem:[#allocation7 + $0x240] ss:$16 sps:$4 sm:$0xff]   ;;  %v3869_v30 = vld [vmem:[#allocation7 + $0x248] ss:$16 sps:$4 sm:$0xff]  }
 0x251   :  { %2516 = vmatprep.subr.bf16.mxu0 %v3820_v31  ;;  %2598 = vmatprep.subr.bf16.mxu1 %v3823_v32  ;;  %v3874_v31 = vld [vmem:[#allocation7 + $0x264] ss:$16 sps:$4 sm:$0xff]   ;;  %v3877_v32 = vld [vmem:[#allocation7 + $0x26c] ss:$16 sps:$4 sm:$0xff]  }
 0x254   :  { %2517 = vmatpush1.bf16.msra.mxu0 %v3818_v19  ;;  %2599 = vmatpush1.bf16.msra.mxu1 %v3821_v34  ;;  %v3872_v19 = vld [vmem:[#allocation7 + $0x260] ss:$16 sps:$4 sm:$0xff]   ;;  %v3875_v34 = vld [vmem:[#allocation7 + $0x268] ss:$16 sps:$4 sm:$0xff]  }
 0x255   :  { %2518 = vmatprep.subr.bf16.mxu0 %v3826_v35  ;;  %2600 = vmatprep.subr.bf16.mxu1 %v3829_v36  ;;  %v3880_v35 = vld [vmem:[#allocation7 + $0x284] ss:$16 sps:$4 sm:$0xff]   ;;  %v3883_v36 = vld [vmem:[#allocation7 + $0x28c] ss:$16 sps:$4 sm:$0xff]  }
 0x258   :  { %2519 = vmatpush1.bf16.msra.mxu0 %v3824_v37  ;;  %2601 = vmatpush1.bf16.msra.mxu1 %v3827_v38  ;;  %v3878_v37 = vld [vmem:[#allocation7 + $0x280] ss:$16 sps:$4 sm:$0xff]   ;;  %v3881_v38 = vld [vmem:[#allocation7 + $0x288] ss:$16 sps:$4 sm:$0xff]  }
 0x259   :  { %2520 = vmatprep.subr.bf16.mxu0 %v3832_v39  ;;  %2602 = vmatprep.subr.bf16.mxu1 %v3835_v40  ;;  %v3886_v39 = vld [vmem:[#allocation7 + $0x2a4] ss:$16 sps:$4 sm:$0xff]   ;;  %v3889_v40 = vld [vmem:[#allocation7 + $0x2ac] ss:$16 sps:$4 sm:$0xff]  }
 0x25c   :  { %2521 = vmatpush1.bf16.msra.mxu0 %v3830_v41  ;;  %2603 = vmatpush1.bf16.msra.mxu1 %v3833_v42  ;;  %v3884_v41 = vld [vmem:[#allocation7 + $0x2a0] ss:$16 sps:$4 sm:$0xff]   ;;  %v3887_v42 = vld [vmem:[#allocation7 + $0x2a8] ss:$16 sps:$4 sm:$0xff]  }
 0x25d   :  { %2522 = vmatprep.subr.bf16.mxu0 %v3838_v43  ;;  %2604 = vmatprep.subr.bf16.mxu1 %v3841_v44  ;;  %v3892_v43 = vld [vmem:[#allocation7 + $0x2c4] ss:$16 sps:$4 sm:$0xff]   ;;  %v3895_v44 = vld [vmem:[#allocation7 + $0x2cc] ss:$16 sps:$4 sm:$0xff]  }
 0x260   :  { %2523 = vmatpush1.bf16.msra.mxu0 %v3836_v45  ;;  %2605 = vmatpush1.bf16.msra.mxu1 %v3839_v46  ;;  %v3890_v45 = vld [vmem:[#allocation7 + $0x2c0] ss:$16 sps:$4 sm:$0xff]   ;;  %v3893_v46 = vld [vmem:[#allocation7 + $0x2c8] ss:$16 sps:$4 sm:$0xff]  }
 0x261   :  { %2524 = vmatprep.subr.bf16.mxu0 %v3844_v47  ;;  %2606 = vmatprep.subr.bf16.mxu1 %v3847_v48  ;;  %v3898_v47 = vld [vmem:[#allocation7 + $0x2e4] ss:$16 sps:$4 sm:$0xff]   ;;  %v3901_v48 = vld [vmem:[#allocation7 + $0x2ec] ss:$16 sps:$4 sm:$0xff]  }
 0x264   :  { %2525 = vmatpush1.bf16.msra.mxu0 %v3842_v49  ;;  %2607 = vmatpush1.bf16.msra.mxu1 %v3845_v50  ;;  %v3896_v49 = vld [vmem:[#allocation7 + $0x2e0] ss:$16 sps:$4 sm:$0xff]   ;;  %v3899_v50 = vld [vmem:[#allocation7 + $0x2e8] ss:$16 sps:$4 sm:$0xff]  }
 0x265   :  { %2526 = vmatprep.subr.bf16.mxu0 %v3850_v51  ;;  %2608 = vmatprep.subr.bf16.mxu1 %v3853_v52  ;;  %v3904_v51 = vld [vmem:[#allocation7 + $0x304] ss:$16 sps:$4 sm:$0xff]   ;;  %v3907_v52 = vld [vmem:[#allocation7 + $0x30c] ss:$16 sps:$4 sm:$0xff]  }
 0x268   :  { %2527 = vmatpush1.bf16.msra.mxu0 %v3848_v53  ;;  %2609 = vmatpush1.bf16.msra.mxu1 %v3851_v54  ;;  %v3902_v53 = vld [vmem:[#allocation7 + $0x300] ss:$16 sps:$4 sm:$0xff]   ;;  %v3905_v54 = vld [vmem:[#allocation7 + $0x308] ss:$16 sps:$4 sm:$0xff]  }
 0x269   :  { %2537 = vmatprep.subr.bf16.mxu0 %v3856_v55  ;;  %2619 = vmatprep.subr.bf16.mxu1 %v3859_v56  ;;  %v3910_v55 = vld [vmem:[#allocation7 + $0x324] ss:$16 sps:$4 sm:$0xff]   ;;  %v3913_v56 = vld [vmem:[#allocation7 + $0x32c] ss:$16 sps:$4 sm:$0xff]  }
 0x2fe   :  { %v1605_v63 = vpop.f32.mrb[8].mxu0  ;;  %v4242_v0 = vpop.f32.mrb[8].mxu1 }
 0x2ff   :  { %v3433_v1 = vadd.f32 %v1605_v63, %v873_v33  ;;  %v1607_v2 = vpop.f32.mrb[9].mxu0  ;;  %v1689_v3 = vpop.f32.mrb[9].mxu1  ;;  %v3908_v33 = vld [vmem:[#allocation7 + $0x320] ss:$16 sps:$4 sm:$0xff]   ;;  %v3919_v63 = vld [vmem:[#allocation7 + $0x34c] ss:$16 sps:$4 sm:$0xff]  }
 0x300   :  { %v3434_v4 = vadd.f32 %v1607_v2, %v877_v17  ;;  %v3436_v5 = vadd.f32 %v1689_v3, %v885_v62  ;;  %v1609_v6 = vpop.f32.mrb[10].mxu0  ;;  %v1691_v7 = vpop.f32.mrb[10].mxu1  ;;  %v3911_v17 = vld [vmem:[#allocation7 + $0x328] ss:$16 sps:$4 sm:$0xff]   ;;  %v3916_v62 = vld [vmem:[#allocation7 + $0x344] ss:$16 sps:$4 sm:$0xff]  }
 0x301   :  { %v1694_v8 = vmul.f32 0.2, %v3433_v1  ;;  %v1610_v9 = vpop.f32.mrb[11].mxu0  ;;  %v1692_v10 = vpop.f32.mrb[11].mxu1  ;;  %v3917_v2 = vld [vmem:[#allocation7 + $0x348] ss:$16 sps:$4 sm:$0xff]  }
 0x302   :  { %v1695_v11 = vmul.f32 0.2, %v3434_v4  ;;  %v1697_v12 = vmul.f32 0.2, %v3436_v5  ;;  %v3922_v3 = vld [vmem:[#allocation7 + $0x364] ss:$16 sps:$4 sm:$0xff]  }
 0x303   :  { %v1698_v13 = vmax.f32 %v3433_v1, %v1694_v8  ;;  %v3914_v1 = vld [vmem:[#allocation7 + $0x340] ss:$16 sps:$4 sm:$0xff]   ;;  %v3923_v6 = vld [vmem:[#allocation7 + $0x368] ss:$16 sps:$4 sm:$0xff]   ;;  %v880_v7 = vsub.s32 2, %v4223_v57 }
 0x304   :  { %v1699_v14 = vmax.f32 %v3434_v4, %v1695_v11  ;;  %v1701_v15 = vmax.f32 %v3436_v5, %v1697_v12  ;;  %v3925_v4 = vld [vmem:[#allocation7 + $0x36c] ss:$16 sps:$4 sm:$0xff]   ;;  %v3920_v5 = vld [vmem:[#allocation7 + $0x360] ss:$16 sps:$4 sm:$0xff]   ;;  %v3928_v8 = vld [vmem:[#allocation7 + $0x384] ss:$16 sps:$4 sm:$0xff]  }
 0x305   :  { %v1702_v21 = vpack.c.bf16 %v1698_v13, %v1698_v13  ;;  %v3931_v9 = vld [vmem:[#allocation7 + $0x38c] ss:$16 sps:$4 sm:$0xff]   ;;  %v3926_v10 = vld [vmem:[#allocation7 + $0x380] ss:$16 sps:$4 sm:$0xff]   ;;  %v3929_v11 = vld [vmem:[#allocation7 + $0x388] ss:$16 sps:$4 sm:$0xff]   ;;  %v881_v12 = vrot.slane %v4229_v59, %v880_v7 }
 0x306   :  { %v1703_v16 = vpack.c.bf16 %v1699_v14, %v1699_v14  ;;  %v1705_v24 = vpack.c.bf16 %v1701_v15, %v1701_v15  ;;  %v3934_v13 = vld [vmem:[#allocation7 + $0x3a4] ss:$16 sps:$4 sm:$0xff]   ;;  %v3937_v14 = vld [vmem:[#allocation7 + $0x3ac] ss:$16 sps:$4 sm:$0xff]   ;;  %v3932_v15 = vld [vmem:[#allocation7 + $0x3a0] ss:$16 sps:$4 sm:$0xff]  }
 0x307   :  { %v3946_v59 = vld [vmem:[#allocation7 + $0x3e4] ss:$16 sps:$4 sm:$0xff]  }
 0x308   :  { %2528 = vmatprep.mubr.bf16.mxu0 %v1703_v16  ;;  %2610 = vmatprep.mubr.bf16.mxu1 %v1703_v16  ;;  %v3935_v16 = vld [vmem:[#allocation7 + $0x3a8] ss:$16 sps:$4 sm:$0xff]  }
 0x309   :  { %2529 = vmatmul.mubr.bf16.vlgmr.msra.gmra.mrb[12].mxu0 %v1702_v21  ;;  %2611 = vmatmul.mubr.bf16.vlgmr.msra.gmra.mrb[12].mxu1 %v1702_v21  ;;  %v3943_v21 = vld [vmem:[#allocation7 + $0x3cc] ss:$16 sps:$4 sm:$0xff]  }
 0x30a   :  { %2538 = vmatpush1.bf16.msra.mxu0 %v3854_v18  ;;  %2620 = vmatpush1.bf16.msra.mxu1 %v3857_v20  ;;  %v3435_v18 = vadd.f32 %v4242_v0, %v881_v12  ;;  %v3940_v20 = vld [vmem:[#allocation7 + $0x3c4] ss:$16 sps:$4 sm:$0xff]  }
 0x30b   :  { %2569 = vmatprep.mubr.bf16.mxu0 %v1705_v24  ;;  %2651 = vmatprep.mubr.bf16.mxu1 %v1705_v24  ;;  %v3950_v0 = vld [vmem:[%s4370_s8 + $0x40] sm:$0xff]  }
 0x30c   :  { %2539 = vmatprep.subr.bf16.mxu0 %v3862_v22  ;;  %2621 = vmatprep.subr.bf16.mxu1 %v3865_v23  ;;  %v3938_v22 = vld [vmem:[#allocation7 + $0x3c0] ss:$16 sps:$4 sm:$0xff]   ;;  %v3941_v23 = vld [vmem:[#allocation7 + $0x3c8] ss:$16 sps:$4 sm:$0xff]   ;;  %v1696_v24 = vmul.f32 0.2, %v3435_v18 }
 0x30e   :  { %2540 = vmatpush1.bf16.msra.mxu0 %v3860_v25  ;;  %2622 = vmatpush1.bf16.msra.mxu1 %v3863_v26  ;;  %v3949_v25 = vld [vmem:[#allocation7 + $0x3ec] ss:$16 sps:$4 sm:$0xff]   ;;  %v3944_v26 = vld [vmem:[#allocation7 + $0x3e0] ss:$16 sps:$4 sm:$0xff]  }
 0x30f   :  { %2541 = vmatprep.subr.bf16.mxu0 %v3868_v27  ;;  %2623 = vmatprep.subr.bf16.mxu1 %v3871_v28  ;;  %v3947_v27 = vld [vmem:[#allocation7 + $0x3e8] ss:$16 sps:$4 sm:$0xff]   ;;  %v1700_v28 = vmax.f32 %v3435_v18, %v1696_v24 }
 0x312   :  { %2542 = vmatpush1.bf16.msra.mxu0 %v3866_v29  ;;  %2624 = vmatpush1.bf16.msra.mxu1 %v3869_v30  ;;  %v3951_v29 = vld [vmem:[%s4370_s8 + $0xc0] sm:$0xff]  }
 0x313   :  { %2543 = vmatprep.subr.bf16.mxu0 %v3874_v31  ;;  %2625 = vmatprep.subr.bf16.mxu1 %v3877_v32  ;;  %v3952_v30 = vld [vmem:[%s4370_s8] sm:$0xff]   ;;  %v1704_v32 = vpack.c.bf16 %v1700_v28, %v1700_v28 }
 0x314   :  { %v3953_v31 = vld [vmem:[%s4370_s8 + $0x80] sm:$0xff]  }
 0x316   :  { %2544 = vmatpush1.bf16.msra.mxu0 %v3872_v19  ;;  %2626 = vmatpush1.bf16.msra.mxu1 %v3875_v34  ;;  %v3954_v19 = vld [vmem:[%s4370_s8 + $0x48] sm:$0xff]  }
 0x317   :  { %2545 = vmatprep.subr.bf16.mxu0 %v3880_v35  ;;  %2627 = vmatprep.subr.bf16.mxu1 %v3883_v36  ;;  %v3955_v34 = vld [vmem:[%s4370_s8 + $0xc8] sm:$0xff]  }
 0x318   :  { %v3956_v35 = vld [vmem:[%s4370_s8 + $0x8] sm:$0xff]  }
 0x319   :  { %v3957_v36 = vld [vmem:[%s4370_s8 + $0x88] sm:$0xff]  }
 0x31a   :  { %2546 = vmatpush1.bf16.msra.mxu0 %v3878_v37  ;;  %2628 = vmatpush1.bf16.msra.mxu1 %v3881_v38  ;;  %v3958_v37 = vld [vmem:[%s4370_s8 + $0x50] sm:$0xff]  }
 0x31b   :  { %2547 = vmatprep.subr.bf16.mxu0 %v3886_v39  ;;  %2629 = vmatprep.subr.bf16.mxu1 %v3889_v40  ;;  %v3959_v38 = vld [vmem:[%s4370_s8 + $0xd0] sm:$0xff]  }
 0x31c   :  { %v3960_v39 = vld [vmem:[%s4370_s8 + $0x10] sm:$0xff]  }
 0x31d   :  { %v3961_v40 = vld [vmem:[%s4370_s8 + $0x90] sm:$0xff]  }
 0x31e   :  { %2548 = vmatpush1.bf16.msra.mxu0 %v3884_v41  ;;  %2630 = vmatpush1.bf16.msra.mxu1 %v3887_v42  ;;  %v3962_v41 = vld [vmem:[%s4370_s8 + $0x58] sm:$0xff]  }
 0x31f   :  { %2549 = vmatprep.subr.bf16.mxu0 %v3892_v43  ;;  %2631 = vmatprep.subr.bf16.mxu1 %v3895_v44  ;;  %v3963_v42 = vld [vmem:[%s4370_s8 + $0xd8] sm:$0xff]  }
 0x320   :  { %v3964_v43 = vld [vmem:[%s4370_s8 + $0x18] sm:$0xff]  }
 0x321   :  { %v3965_v44 = vld [vmem:[%s4370_s8 + $0x98] sm:$0xff]  }
 0x322   :  { %2550 = vmatpush1.bf16.msra.mxu0 %v3890_v45  ;;  %2632 = vmatpush1.bf16.msra.mxu1 %v3893_v46  ;;  %v3966_v45 = vld [vmem:[%s4370_s8 + $0x60] sm:$0xff]  }
 0x323   :  { %2551 = vmatprep.subr.bf16.mxu0 %v3898_v47  ;;  %2633 = vmatprep.subr.bf16.mxu1 %v3901_v48  ;;  %v3967_v46 = vld [vmem:[%s4370_s8 + $0xe0] sm:$0xff]  }
 0x324   :  { %v3968_v47 = vld [vmem:[%s4370_s8 + $0x20] sm:$0xff]  }
 0x325   :  { %v3969_v48 = vld [vmem:[%s4370_s8 + $0xa0] sm:$0xff]  }
 0x326   :  { %2552 = vmatpush1.bf16.msra.mxu0 %v3896_v49  ;;  %2634 = vmatpush1.bf16.msra.mxu1 %v3899_v50  ;;  %v3970_v49 = vld [vmem:[%s4370_s8 + $0x68] sm:$0xff]  }
 0x327   :  { %2553 = vmatprep.subr.bf16.mxu0 %v3904_v51  ;;  %2635 = vmatprep.subr.bf16.mxu1 %v3907_v52  ;;  %v3971_v50 = vld [vmem:[%s4370_s8 + $0xe8] sm:$0xff]  }
 0x328   :  { %v3972_v51 = vld [vmem:[%s4370_s8 + $0x28] sm:$0xff]  }
 0x329   :  { %v3973_v52 = vld [vmem:[%s4370_s8 + $0xa8] sm:$0xff]  }
 0x32a   :  { %2554 = vmatpush1.bf16.msra.mxu0 %v3902_v53  ;;  %2636 = vmatpush1.bf16.msra.mxu1 %v3905_v54  ;;  %v3974_v53 = vld [vmem:[%s4370_s8 + $0x70] sm:$0xff]  }
 0x32b   :  { %2555 = vmatprep.subr.bf16.mxu0 %v3910_v55  ;;  %2637 = vmatprep.subr.bf16.mxu1 %v3913_v56  ;;  %v3975_v54 = vld [vmem:[%s4370_s8 + $0xf0] sm:$0xff]  }
 0x32c   :  { %v3976_v55 = vld [vmem:[%s4370_s8 + $0x30] sm:$0xff]  }
 0x32d   :  { %v3977_v56 = vld [vmem:[%s4370_s8 + $0xb0] sm:$0xff]  }
 0x32e   :  { %2556 = vmatpush1.bf16.msra.mxu0 %v3908_v33  ;;  %2638 = vmatpush1.bf16.msra.mxu1 %v3911_v17  ;;  %v3978_v33 = vld [vmem:[%s4370_s8 + $0x78] sm:$0xff]  }
 0x32f   :  { %2557 = vmatprep.subr.bf16.mxu0 %v3916_v62  ;;  %2639 = vmatprep.subr.bf16.mxu1 %v3919_v63  ;;  %v3979_v17 = vld [vmem:[%s4370_s8 + $0xf8] sm:$0xff]  }
 0x330   :  { %v3980_v62 = vld [vmem:[%s4370_s8 + $0x38] sm:$0xff]  }
 0x331   :  { %v3981_v63 = vld [vmem:[%s4370_s8 + $0xb8] sm:$0xff]  }
 0x332   :  { %2558 = vmatpush1.bf16.msra.mxu0 %v3914_v1  ;;  %2640 = vmatpush1.bf16.msra.mxu1 %v3917_v2  ;;  %v1834_v1 = vld [vmem:[%s4369_s7] sm:$0xf] }
 0x333   :  { %2559 = vmatprep.subr.bf16.mxu0 %v3922_v3  ;;  %2641 = vmatprep.subr.bf16.mxu1 %v3925_v4  ;;  %v1839_v2 = vrot.slane %v1834_v1, %v872_v58  ;;  %v1847_v3 = vrot.slane %v1834_v1, %v880_v7  ;;  %v1843_v4 = vrot.slane %v1834_v1, %v876_v60 }
 0x336   :  { %2560 = vmatpush1.bf16.msra.mxu0 %v3920_v5  ;;  %2642 = vmatpush1.bf16.msra.mxu1 %v3923_v6  ;;  %v1851_v5 = vrot.slane %v1834_v1, %v884_v61 }
 0x337   :  { %2561 = vmatprep.subr.bf16.mxu0 %v3928_v8  ;;  %2643 = vmatprep.subr.bf16.mxu1 %v3931_v9 }
 0x33a   :  { %2562 = vmatpush1.bf16.msra.mxu0 %v3926_v10  ;;  %2644 = vmatpush1.bf16.msra.mxu1 %v3929_v11 }
 0x33b   :  { %2563 = vmatprep.subr.bf16.mxu0 %v3934_v13  ;;  %2645 = vmatprep.subr.bf16.mxu1 %v3937_v14 }
 0x33e   :  { %2564 = vmatpush1.bf16.msra.mxu0 %v3932_v15  ;;  %2646 = vmatpush1.bf16.msra.mxu1 %v3935_v16 }
 0x33f   :  { %2565 = vmatprep.subr.bf16.mxu0 %v3940_v20  ;;  %2647 = vmatprep.subr.bf16.mxu1 %v3943_v21 }
 0x342   :  { %2566 = vmatpush1.bf16.msra.mxu0 %v3938_v22  ;;  %2648 = vmatpush1.bf16.msra.mxu1 %v3941_v23 }
 0x343   :  { %2567 = vmatprep.subr.bf16.mxu0 %v3946_v59  ;;  %2649 = vmatprep.subr.bf16.mxu1 %v3949_v25 }
 0x346   :  { %2568 = vmatpush1.bf16.msra.mxu0 %v3944_v26  ;;  %2650 = vmatpush1.bf16.msra.mxu1 %v3947_v27 }
 0x347   :  { %3381 = vmatprep.subr.bf16.mxu0 %v3950_v0  ;;  %3403 = vmatprep.subr.bf16.mxu1 %v3951_v29  ;;  %v3348_v0 = vld [vmem:[%s4371_s9] ss:$0 sm:$0xff] }
 0x349   :  { %2570 = vmatmul.mubr.bf16.vlgmr.msra.gmra.mrb[12].mxu0 %v1704_v32  ;;  %2652 = vmatmul.mubr.bf16.vlgmr.msra.gmra.mrb[12].mxu1 %v1704_v32 }
 0x34a   :  { %3382 = vmatpush3.bf16.msra.mxu0 %v3952_v30  ;;  %3404 = vmatpush3.bf16.msra.mxu1 %v3953_v31 }
 0x34b   :  { %3383 = vmatprep.subr.bf16.mxu0 %v3954_v19  ;;  %3405 = vmatprep.subr.bf16.mxu1 %v3955_v34 }
 0x34e   :  { %3384 = vmatpush3.bf16.msra.mxu0 %v3956_v35  ;;  %3406 = vmatpush3.bf16.msra.mxu1 %v3957_v36 }
 0x34f   :  { %3385 = vmatprep.subr.bf16.mxu0 %v3958_v37  ;;  %3407 = vmatprep.subr.bf16.mxu1 %v3959_v38 }
 0x352   :  { %3386 = vmatpush3.bf16.msra.mxu0 %v3960_v39  ;;  %3408 = vmatpush3.bf16.msra.mxu1 %v3961_v40 }
 0x353   :  { %3387 = vmatprep.subr.bf16.mxu0 %v3962_v41  ;;  %3409 = vmatprep.subr.bf16.mxu1 %v3963_v42 }
 0x356   :  { %3388 = vmatpush3.bf16.msra.mxu0 %v3964_v43  ;;  %3410 = vmatpush3.bf16.msra.mxu1 %v3965_v44 }
 0x357   :  { %3389 = vmatprep.subr.bf16.mxu0 %v3966_v45  ;;  %3411 = vmatprep.subr.bf16.mxu1 %v3967_v46 }
 0x35a   :  { %3390 = vmatpush3.bf16.msra.mxu0 %v3968_v47  ;;  %3412 = vmatpush3.bf16.msra.mxu1 %v3969_v48 }
 0x35b   :  { %3391 = vmatprep.subr.bf16.mxu0 %v3970_v49  ;;  %3413 = vmatprep.subr.bf16.mxu1 %v3971_v50 }
 0x35e   :  { %3392 = vmatpush3.bf16.msra.mxu0 %v3972_v51  ;;  %3414 = vmatpush3.bf16.msra.mxu1 %v3973_v52 }
 0x35f   :  { %3393 = vmatprep.subr.bf16.mxu0 %v3974_v53  ;;  %3415 = vmatprep.subr.bf16.mxu1 %v3975_v54 }
 0x362   :  { %3394 = vmatpush3.bf16.msra.mxu0 %v3976_v55  ;;  %3416 = vmatpush3.bf16.msra.mxu1 %v3977_v56 }
 0x363   :  { %3395 = vmatprep.subr.bf16.mxu0 %v3978_v33  ;;  %3417 = vmatprep.subr.bf16.mxu1 %v3979_v17 }
 0x366   :  { %3396 = vmatpush3.bf16.msra.mxu0 %v3980_v62  ;;  %3418 = vmatpush3.bf16.msra.mxu1 %v3981_v63 }
 0x41c   :  { %v2571_v6 = vpop.f32.mrb[12].mxu0  ;;  %v2653_v8 = vpop.f32.mrb[12].mxu1 }
 0x41d   :  { %v3437_v9 = vadd.f32 %v2571_v6, %v1839_v2  ;;  %v3439_v10 = vadd.f32 %v2653_v8, %v1847_v3  ;;  %v2573_v11 = vpop.f32.mrb[13].mxu0  ;;  %v2655_v12 = vpop.f32.mrb[13].mxu1 }
 0x41e   :  { %v3438_v13 = vadd.f32 %v2573_v11, %v1843_v4  ;;  %v3440_v14 = vadd.f32 %v2655_v12, %v1851_v5  ;;  %v2575_v15 = vpop.f32.mrb[14].mxu0  ;;  %v2657_v16 = vpop.f32.mrb[14].mxu1 }
 0x41f   :  { %v2660_v58 = vmul.f32 0.2, %v3437_v9  ;;  %v2662_v18 = vmul.f32 0.2, %v3439_v10  ;;  %v2576_v20 = vpop.f32.mrb[15].mxu0  ;;  %v2658_v7 = vpop.f32.mrb[15].mxu1 }
 0x420   :  { %v2661_v21 = vmul.f32 0.2, %v3438_v13  ;;  %v2663_v22 = vmul.f32 0.2, %v3440_v14 }
 0x421   :  { %v2664_v60 = vmax.f32 %v3437_v9, %v2660_v58  ;;  %v2666_v23 = vmax.f32 %v3439_v10, %v2662_v18 }
 0x422   :  { %v2665_v57 = vmax.f32 %v3438_v13, %v2661_v21  ;;  %v2667_v61 = vmax.f32 %v3440_v14, %v2663_v22 }
 0x423   :  { %v2668_v25 = vpack.c.bf16 %v2664_v60, %v2664_v60  ;;  %v2670_v26 = vpack.c.bf16 %v2666_v23, %v2666_v23 }
 0x424   :  { %v2669_v24 = vpack.c.bf16 %v2665_v57, %v2665_v57  ;;  %v2671_v59 = vpack.c.bf16 %v2667_v61, %v2667_v61 }
 0x426   :  { %2967 = vmatprep.mubr.bf16.mxu0 %v2669_v24  ;;  %3007 = vmatprep.mubr.bf16.mxu1 %v2671_v59 }
 0x427   :  { %2968 = vmatmul.mubr.bf16.vlgmr.msra.gmra.mrb[16].mxu0 %v2668_v25  ;;  %3008 = vmatmul.mubr.bf16.vlgmr.msra.gmra.mrb[16].mxu1 %v2670_v26 }
 0x4fa   :  { %v3397_v27 = vpop.f32.mrb[16].mxu0  ;;  %v3419_v28 = vpop.f32.mrb[16].mxu1 }
 0x4fb   :  { %v3398_v29 = vpop.f32.mrb[17].mxu0  ;;  %v3420_v30 = vpop.f32.mrb[17].mxu1 }
 0x4fc   :  { %v3399_v31 = vadd.f32 %v3398_v29, %v3397_v27  ;;  %v3421_v32 = vadd.f32 %v3420_v30, %v3419_v28  ;;  %v3400_v19 = vpop.f32.mrb[18].mxu0  ;;  %v3422_v34 = vpop.f32.mrb[18].mxu1 }
 0x4fd   :  { %v3401_v35 = vpop.f32.mrb[19].mxu0  ;;  %v3423_v36 = vpop.f32.mrb[19].mxu1 }
 0x4fe   :  { %v2970_v37 = vadd.f32 %v3399_v31, %v3348_v0 }
 0x500   :  { %v3010_v38 = vadd.f32 %v3421_v32, %v2970_v37 }
 0x502   :  { %3015 = vst [vmem:[%s4372_s10] sm:$0xff] %v3010_v38 }
 0x503   :  { %3020 = vsyncpa [#allocation3], 1 }
 0x504   :  { %3021 = vsyncpa [#allocation5], 1 }
 0x505   :  { %3022 = vsyncpa [#allocation8], 1 }

</bundles_post_ra>
